<compile_context>
chip_gen: v6e
topology: v6e:2x2x1
jax: 0.10.0
libtpu: 0.0.40
codegen_flags: <defaults>
</compile_context>

<pallas_src>
import math

import jax
import jax.numpy as jnp
from jax.experimental import pallas as pl
from jax.experimental.pallas import tpu as pltpu

LN_EPS = 1e-5                      # PyTorch nn.LayerNorm default
INV_SQRT2 = 1.0 / math.sqrt(2.0)   # for exact erf-based GELU


# ----------------------------------------------------------------------------
# Single fused kernel: the whole structure_emb_mlp forward pass.
# ----------------------------------------------------------------------------
def _fused_mlp_kernel(x_ref,
                      w0a_ref, p0a_ref, w0b_ref, p0b_ref,
                      w1a_ref, p1a_ref, w1b_ref, p1b_ref,
                      w2a_ref, p2a_ref, w2b_ref, p2b_ref,
                      o_ref):
    """x -> [Lin+LN+GELU]x2 -> 4x residual([Lin+LN+GELU]x2) -> Lin+LN+GELU -> Lin+LN."""

    def layer(x, w_ref, p_ref, apply_gelu):
        # p_ref packs [bias; gamma; beta] as a (3, Dout) tensor.
        p = p_ref[...]
        # Linear on the MXU with f32 accumulation.
        y = jnp.dot(x, w_ref[...], preferred_element_type=jnp.float32) + p[0:1, :]
        # LayerNorm over the feature (lane) axis — biased variance, like PyTorch.
        mean = jnp.mean(y, axis=-1, keepdims=True)
        c = y - mean
        var = jnp.mean(c * c, axis=-1, keepdims=True)
        y = c * jax.lax.rsqrt(var + LN_EPS) * p[1:2, :] + p[2:3, :]
        if apply_gelu:
            # Exact GELU: 0.5 * x * (1 + erf(x / sqrt(2)))  (nn.GELU default).
            y = 0.5 * y * (1.0 + jax.lax.erf(y * jnp.float32(INV_SQRT2)))
        return y

    x = x_ref[...]                                   # (B, S) f32

    # stc2emb_0
    x = layer(x, w0a_ref, p0a_ref, True)             # (B, 4H)
    x = layer(x, w0b_ref, p0b_ref, True)             # (B, 4H)

    # 4 residual blocks, all reusing the same stc2emb_1 weights (VMEM-resident).
    # Static unroll: trip count is tiny and fixed; residual add stays in f32.
    for _ in range(4):
        h = layer(x, w1a_ref, p1a_ref, True)
        h = layer(h, w1b_ref, p1b_ref, True)
        x = x + h

    # stc2emb_2
    y = layer(x, w2a_ref, p2a_ref, True)             # (B, 2H)
    y = layer(y, w2b_ref, p2b_ref, False)            # (B, H)  — no GELU on last

    o_ref[...] = y.astype(o_ref.dtype)               # only this hits HBM


def structure_emb_mlp_forward(params, inputs):
    """Runs the whole forward as a single pallas_call; returns (B, 1, H)."""
    B = inputs.shape[0]
    H = params["w2b"].shape[1]
    vmem = pl.BlockSpec(memory_space=pltpu.MemorySpace.VMEM)
    y = pl.pallas_call(
        _fused_mlp_kernel,
        out_shape=jax.ShapeDtypeStruct((B, H), jnp.float32),
        in_specs=[vmem] * 13,
        out_specs=vmem,
    )(inputs,
      params["w0a"], params["p0a"], params["w0b"], params["p0b"],
      params["w1a"], params["p1a"], params["w1b"], params["p1b"],
      params["w2a"], params["p2a"], params["w2b"], params["p2b"])
    # .unsqueeze(1)
    return y[:, None, :]


# ----------------------------------------------------------------------------
# Parameter construction (deterministic, synthetic)
# ----------------------------------------------------------------------------
def _init_linear(key, din, dout):
    kw, kb = jax.random.split(key)
    bound = 1.0 / math.sqrt(din)
    w = jax.random.uniform(kw, (din, dout), jnp.float32, -bound, bound)
    b = jax.random.uniform(kb, (dout,), jnp.float32, -bound, bound)
    return w, b


def _pack(bias, gamma, beta):
    # (3, Dout): [bias; LN gamma; LN beta]
    return jnp.stack([bias, gamma, beta], axis=0)


def init_params(key, structure_size, hidden_size):
    H, H4, H2 = hidden_size, 4 * hidden_size, 2 * hidden_size
    keys = jax.random.split(key, 6)
    p = {}

    def make(name, k, din, dout):
        w, b = _init_linear(k, din, dout)
        g = jnp.ones((dout,), jnp.float32)
        be = jnp.zeros((dout,), jnp.float32)
        p["w" + name] = w
        p["p" + name] = _pack(b, g, be)

    # stc2emb_0: Linear(S,4H)+LN+GELU+Drop, Linear(4H,4H)+LN+GELU+Drop
    make("0a", keys[0], structure_size, H4)
    make("0b", keys[1], H4, H4)
    # stc2emb_1: Linear(4H,4H)+LN+GELU+Drop, Linear(4H,4H)+LN+GELU+Drop (reused 4x)
    make("1a", keys[2], H4, H4)
    make("1b", keys[3], H4, H4)
    # stc2emb_2: Linear(4H,2H)+LN+GELU+Drop, Linear(2H,H)+LN
    make("2a", keys[4], H4, H2)
    make("2b", keys[5], H2, H)
    return p


# ----------------------------------------------------------------------------
# Pure-JAX reference (for correctness check)
# ----------------------------------------------------------------------------
def _ref_layer(x, w, packed, apply_gelu):
    b, g, beta = packed[0], packed[1], packed[2]
    y = x @ w + b
    mean = jnp.mean(y, axis=-1, keepdims=True)
    var = jnp.mean((y - mean) ** 2, axis=-1, keepdims=True)
    y = (y - mean) / jnp.sqrt(var + LN_EPS) * g + beta
    if apply_gelu:
        y = 0.5 * y * (1.0 + jax.lax.erf(y / jnp.sqrt(2.0)))
    return y


def _ref_forward(p, inputs):
    x = _ref_layer(inputs, p["w0a"], p["p0a"], True)
    x = _ref_layer(x, p["w0b"], p["p0b"], True)
    for _ in range(4):
        h = _ref_layer(x, p["w1a"], p["p1a"], True)
        h = _ref_layer(h, p["w1b"], p["p1b"], True)
        x = x + h
    y = _ref_layer(x, p["w2a"], p["p2a"], True)
    y = _ref_layer(y, p["w2b"], p["p2b"], False)
    return y[:, None, :]


if __name__ == "__main__":
    # config: structure_size=16, hidden_size=32  ->  4H=128, 2H=64
    STRUCTURE_SIZE = 16
    HIDDEN_SIZE = 32
    BATCH = 8

    key = jax.random.PRNGKey(0)
    k_params, k_x = jax.random.split(key)
    params = init_params(k_params, STRUCTURE_SIZE, HIDDEN_SIZE)
    inputs = jax.random.normal(k_x, (BATCH, STRUCTURE_SIZE), jnp.float32)

    out = structure_emb_mlp_forward(params, inputs)
    out = jax.block_until_ready(out)
    assert out.shape == (BATCH, 1, HIDDEN_SIZE), out.shape

    ref = jax.block_until_ready(_ref_forward(params, inputs))
    assert jnp.allclose(out, ref, atol=1e-4, rtol=1e-4), (
        float(jnp.max(jnp.abs(out - ref))))

    print("KERNEL_OK")
</pallas_src>

<mosaic_0001>
module attributes {stable_mosaic.version = 11 : i64} {
  func.func @_fused_mlp_kernel(%arg0: memref<8x16xf32, #tpu.memory_space<vmem>>, %arg1: memref<16x128xf32, #tpu.memory_space<vmem>>, %arg2: memref<3x128xf32, #tpu.memory_space<vmem>>, %arg3: memref<128x128xf32, #tpu.memory_space<vmem>>, %arg4: memref<3x128xf32, #tpu.memory_space<vmem>>, %arg5: memref<128x128xf32, #tpu.memory_space<vmem>>, %arg6: memref<3x128xf32, #tpu.memory_space<vmem>>, %arg7: memref<128x128xf32, #tpu.memory_space<vmem>>, %arg8: memref<3x128xf32, #tpu.memory_space<vmem>>, %arg9: memref<128x64xf32, #tpu.memory_space<vmem>>, %arg10: memref<3x64xf32, #tpu.memory_space<vmem>>, %arg11: memref<64x32xf32, #tpu.memory_space<vmem>>, %arg12: memref<3x32xf32, #tpu.memory_space<vmem>>, %arg13: memref<8x32xf32, #tpu.memory_space<vmem>>) attributes {dimension_semantics = [], scalar_prefetch = 0 : i64, scratch_operands = 0 : i64, tpu.core_type = #tpu.core_type<tc>} {
    %c0 = arith.constant 0 : index
    %c0_0 = arith.constant 0 : index
    %0 = vector.load %arg0[%c0, %c0_0] : memref<8x16xf32, #tpu.memory_space<vmem>>, vector<8x16xf32>
    %c0_1 = arith.constant 0 : index
    %c0_2 = arith.constant 0 : index
    %1 = vector.load %arg2[%c0_1, %c0_2] : memref<3x128xf32, #tpu.memory_space<vmem>>, vector<3x128xf32>
    %c0_3 = arith.constant 0 : index
    %c0_4 = arith.constant 0 : index
    %2 = vector.load %arg1[%c0_3, %c0_4] : memref<16x128xf32, #tpu.memory_space<vmem>>, vector<16x128xf32>
    %cst = arith.constant dense<0.000000e+00> : vector<8x128xf32>
    %3 = tpu.matmul %0, %2, %cst {dimension_numbers = #tpu.dot_dimension_numbers<[1], [0], [0], [1], [0, 0, 1, 1], [], []>} : vector<8x16xf32>, vector<16x128xf32>, vector<8x128xf32> -> vector<8x128xf32>
    %4 = vector.extract_strided_slice %1 {offsets = [0, 0], sizes = [1, 128], strides = [1, 1]} : vector<3x128xf32> to vector<1x128xf32>
    %5 = vector.broadcast %4 : vector<1x128xf32> to vector<8x128xf32>
    %6 = arith.addf %3, %5 : vector<8x128xf32>
    %cst_5 = arith.constant dense<0.000000e+00> : vector<8xf32>
    %7 = vector.multi_reduction <add>, %6, %cst_5 [1] : vector<8x128xf32> to vector<8xf32>
    %8 = vector.shape_cast %7 : vector<8xf32> to vector<8x1xf32>
    %cst_6 = arith.constant 1.280000e+02 : f32
    %9 = vector.broadcast %cst_6 : f32 to vector<8x1xf32>
    %10 = arith.divf %8, %9 : vector<8x1xf32>
    %11 = vector.broadcast %10 : vector<8x1xf32> to vector<8x128xf32>
    %12 = arith.subf %6, %11 : vector<8x128xf32>
    %13 = arith.mulf %12, %12 : vector<8x128xf32>
    %cst_7 = arith.constant dense<0.000000e+00> : vector<8xf32>
    %14 = vector.multi_reduction <add>, %13, %cst_7 [1] : vector<8x128xf32> to vector<8xf32>
    %15 = vector.shape_cast %14 : vector<8xf32> to vector<8x1xf32>
    %cst_8 = arith.constant 1.280000e+02 : f32
    %16 = vector.broadcast %cst_8 : f32 to vector<8x1xf32>
    %17 = arith.divf %15, %16 : vector<8x1xf32>
    %cst_9 = arith.constant 9.99999974E-6 : f32
    %18 = vector.broadcast %cst_9 : f32 to vector<8x1xf32>
    %19 = arith.addf %17, %18 : vector<8x1xf32>
    %20 = math.rsqrt %19 : vector<8x1xf32>
    %21 = vector.broadcast %20 : vector<8x1xf32> to vector<8x128xf32>
    %22 = arith.mulf %12, %21 : vector<8x128xf32>
    %23 = vector.extract_strided_slice %1 {offsets = [1, 0], sizes = [1, 128], strides = [1, 1]} : vector<3x128xf32> to vector<1x128xf32>
    %24 = vector.broadcast %23 : vector<1x128xf32> to vector<8x128xf32>
    %25 = arith.mulf %22, %24 : vector<8x128xf32>
    %26 = vector.extract_strided_slice %1 {offsets = [2, 0], sizes = [1, 128], strides = [1, 1]} : vector<3x128xf32> to vector<1x128xf32>
    %27 = vector.broadcast %26 : vector<1x128xf32> to vector<8x128xf32>
    %28 = arith.addf %25, %27 : vector<8x128xf32>
    %cst_10 = arith.constant 5.000000e-01 : f32
    %29 = vector.broadcast %cst_10 : f32 to vector<8x128xf32>
    %30 = arith.mulf %29, %28 : vector<8x128xf32>
    %cst_11 = arith.constant 0.707106769 : f32
    %31 = vector.broadcast %cst_11 : f32 to vector<8x128xf32>
    %32 = arith.mulf %28, %31 : vector<8x128xf32>
    %33 = math.erf %32 : vector<8x128xf32>
    %cst_12 = arith.constant 1.000000e+00 : f32
    %34 = vector.broadcast %cst_12 : f32 to vector<8x128xf32>
    %35 = arith.addf %34, %33 : vector<8x128xf32>
    %36 = arith.mulf %30, %35 : vector<8x128xf32>
    %c0_13 = arith.constant 0 : index
    %c0_14 = arith.constant 0 : index
    %37 = vector.load %arg4[%c0_13, %c0_14] : memref<3x128xf32, #tpu.memory_space<vmem>>, vector<3x128xf32>
    %c0_15 = arith.constant 0 : index
    %c0_16 = arith.constant 0 : index
    %38 = vector.load %arg3[%c0_15, %c0_16] : memref<128x128xf32, #tpu.memory_space<vmem>>, vector<128x128xf32>
    %cst_17 = arith.constant dense<0.000000e+00> : vector<8x128xf32>
    %39 = tpu.matmul %36, %38, %cst_17 {dimension_numbers = #tpu.dot_dimension_numbers<[1], [0], [0], [1], [0, 0, 1, 1], [], []>} : vector<8x128xf32>, vector<128x128xf32>, vector<8x128xf32> -> vector<8x128xf32>
    %40 = vector.extract_strided_slice %37 {offsets = [0, 0], sizes = [1, 128], strides = [1, 1]} : vector<3x128xf32> to vector<1x128xf32>
    %41 = vector.broadcast %40 : vector<1x128xf32> to vector<8x128xf32>
    %42 = arith.addf %39, %41 : vector<8x128xf32>
    %cst_18 = arith.constant dense<0.000000e+00> : vector<8xf32>
    %43 = vector.multi_reduction <add>, %42, %cst_18 [1] : vector<8x128xf32> to vector<8xf32>
    %44 = vector.shape_cast %43 : vector<8xf32> to vector<8x1xf32>
    %cst_19 = arith.constant 1.280000e+02 : f32
    %45 = vector.broadcast %cst_19 : f32 to vector<8x1xf32>
    %46 = arith.divf %44, %45 : vector<8x1xf32>
    %47 = vector.broadcast %46 : vector<8x1xf32> to vector<8x128xf32>
    %48 = arith.subf %42, %47 : vector<8x128xf32>
    %49 = arith.mulf %48, %48 : vector<8x128xf32>
    %cst_20 = arith.constant dense<0.000000e+00> : vector<8xf32>
    %50 = vector.multi_reduction <add>, %49, %cst_20 [1] : vector<8x128xf32> to vector<8xf32>
    %51 = vector.shape_cast %50 : vector<8xf32> to vector<8x1xf32>
    %cst_21 = arith.constant 1.280000e+02 : f32
    %52 = vector.broadcast %cst_21 : f32 to vector<8x1xf32>
    %53 = arith.divf %51, %52 : vector<8x1xf32>
    %cst_22 = arith.constant 9.99999974E-6 : f32
    %54 = vector.broadcast %cst_22 : f32 to vector<8x1xf32>
    %55 = arith.addf %53, %54 : vector<8x1xf32>
    %56 = math.rsqrt %55 : vector<8x1xf32>
    %57 = vector.broadcast %56 : vector<8x1xf32> to vector<8x128xf32>
    %58 = arith.mulf %48, %57 : vector<8x128xf32>
    %59 = vector.extract_strided_slice %37 {offsets = [1, 0], sizes = [1, 128], strides = [1, 1]} : vector<3x128xf32> to vector<1x128xf32>
    %60 = vector.broadcast %59 : vector<1x128xf32> to vector<8x128xf32>
    %61 = arith.mulf %58, %60 : vector<8x128xf32>
    %62 = vector.extract_strided_slice %37 {offsets = [2, 0], sizes = [1, 128], strides = [1, 1]} : vector<3x128xf32> to vector<1x128xf32>
    %63 = vector.broadcast %62 : vector<1x128xf32> to vector<8x128xf32>
    %64 = arith.addf %61, %63 : vector<8x128xf32>
    %cst_23 = arith.constant 5.000000e-01 : f32
    %65 = vector.broadcast %cst_23 : f32 to vector<8x128xf32>
    %66 = arith.mulf %65, %64 : vector<8x128xf32>
    %cst_24 = arith.constant 0.707106769 : f32
    %67 = vector.broadcast %cst_24 : f32 to vector<8x128xf32>
    %68 = arith.mulf %64, %67 : vector<8x128xf32>
    %69 = math.erf %68 : vector<8x128xf32>
    %cst_25 = arith.constant 1.000000e+00 : f32
    %70 = vector.broadcast %cst_25 : f32 to vector<8x128xf32>
    %71 = arith.addf %70, %69 : vector<8x128xf32>
    %72 = arith.mulf %66, %71 : vector<8x128xf32>
    %c0_26 = arith.constant 0 : index
    %c0_27 = arith.constant 0 : index
    %73 = vector.load %arg6[%c0_26, %c0_27] : memref<3x128xf32, #tpu.memory_space<vmem>>, vector<3x128xf32>
    %c0_28 = arith.constant 0 : index
    %c0_29 = arith.constant 0 : index
    %74 = vector.load %arg5[%c0_28, %c0_29] : memref<128x128xf32, #tpu.memory_space<vmem>>, vector<128x128xf32>
    %cst_30 = arith.constant dense<0.000000e+00> : vector<8x128xf32>
    %75 = tpu.matmul %72, %74, %cst_30 {dimension_numbers = #tpu.dot_dimension_numbers<[1], [0], [0], [1], [0, 0, 1, 1], [], []>} : vector<8x128xf32>, vector<128x128xf32>, vector<8x128xf32> -> vector<8x128xf32>
    %76 = vector.extract_strided_slice %73 {offsets = [0, 0], sizes = [1, 128], strides = [1, 1]} : vector<3x128xf32> to vector<1x128xf32>
    %77 = vector.broadcast %76 : vector<1x128xf32> to vector<8x128xf32>
    %78 = arith.addf %75, %77 : vector<8x128xf32>
    %cst_31 = arith.constant dense<0.000000e+00> : vector<8xf32>
    %79 = vector.multi_reduction <add>, %78, %cst_31 [1] : vector<8x128xf32> to vector<8xf32>
    %80 = vector.shape_cast %79 : vector<8xf32> to vector<8x1xf32>
    %cst_32 = arith.constant 1.280000e+02 : f32
    %81 = vector.broadcast %cst_32 : f32 to vector<8x1xf32>
    %82 = arith.divf %80, %81 : vector<8x1xf32>
    %83 = vector.broadcast %82 : vector<8x1xf32> to vector<8x128xf32>
    %84 = arith.subf %78, %83 : vector<8x128xf32>
    %85 = arith.mulf %84, %84 : vector<8x128xf32>
    %cst_33 = arith.constant dense<0.000000e+00> : vector<8xf32>
    %86 = vector.multi_reduction <add>, %85, %cst_33 [1] : vector<8x128xf32> to vector<8xf32>
    %87 = vector.shape_cast %86 : vector<8xf32> to vector<8x1xf32>
    %cst_34 = arith.constant 1.280000e+02 : f32
    %88 = vector.broadcast %cst_34 : f32 to vector<8x1xf32>
    %89 = arith.divf %87, %88 : vector<8x1xf32>
    %cst_35 = arith.constant 9.99999974E-6 : f32
    %90 = vector.broadcast %cst_35 : f32 to vector<8x1xf32>
    %91 = arith.addf %89, %90 : vector<8x1xf32>
    %92 = math.rsqrt %91 : vector<8x1xf32>
    %93 = vector.broadcast %92 : vector<8x1xf32> to vector<8x128xf32>
    %94 = arith.mulf %84, %93 : vector<8x128xf32>
    %95 = vector.extract_strided_slice %73 {offsets = [1, 0], sizes = [1, 128], strides = [1, 1]} : vector<3x128xf32> to vector<1x128xf32>
    %96 = vector.broadcast %95 : vector<1x128xf32> to vector<8x128xf32>
    %97 = arith.mulf %94, %96 : vector<8x128xf32>
    %98 = vector.extract_strided_slice %73 {offsets = [2, 0], sizes = [1, 128], strides = [1, 1]} : vector<3x128xf32> to vector<1x128xf32>
    %99 = vector.broadcast %98 : vector<1x128xf32> to vector<8x128xf32>
    %100 = arith.addf %97, %99 : vector<8x128xf32>
    %cst_36 = arith.constant 5.000000e-01 : f32
    %101 = vector.broadcast %cst_36 : f32 to vector<8x128xf32>
    %102 = arith.mulf %101, %100 : vector<8x128xf32>
    %cst_37 = arith.constant 0.707106769 : f32
    %103 = vector.broadcast %cst_37 : f32 to vector<8x128xf32>
    %104 = arith.mulf %100, %103 : vector<8x128xf32>
    %105 = math.erf %104 : vector<8x128xf32>
    %cst_38 = arith.constant 1.000000e+00 : f32
    %106 = vector.broadcast %cst_38 : f32 to vector<8x128xf32>
    %107 = arith.addf %106, %105 : vector<8x128xf32>
    %108 = arith.mulf %102, %107 : vector<8x128xf32>
    %c0_39 = arith.constant 0 : index
    %c0_40 = arith.constant 0 : index
    %109 = vector.load %arg8[%c0_39, %c0_40] : memref<3x128xf32, #tpu.memory_space<vmem>>, vector<3x128xf32>
    %c0_41 = arith.constant 0 : index
    %c0_42 = arith.constant 0 : index
    %110 = vector.load %arg7[%c0_41, %c0_42] : memref<128x128xf32, #tpu.memory_space<vmem>>, vector<128x128xf32>
    %cst_43 = arith.constant dense<0.000000e+00> : vector<8x128xf32>
    %111 = tpu.matmul %108, %110, %cst_43 {dimension_numbers = #tpu.dot_dimension_numbers<[1], [0], [0], [1], [0, 0, 1, 1], [], []>} : vector<8x128xf32>, vector<128x128xf32>, vector<8x128xf32> -> vector<8x128xf32>
    %112 = vector.extract_strided_slice %109 {offsets = [0, 0], sizes = [1, 128], strides = [1, 1]} : vector<3x128xf32> to vector<1x128xf32>
    %113 = vector.broadcast %112 : vector<1x128xf32> to vector<8x128xf32>
    %114 = arith.addf %111, %113 : vector<8x128xf32>
    %cst_44 = arith.constant dense<0.000000e+00> : vector<8xf32>
    %115 = vector.multi_reduction <add>, %114, %cst_44 [1] : vector<8x128xf32> to vector<8xf32>
    %116 = vector.shape_cast %115 : vector<8xf32> to vector<8x1xf32>
    %cst_45 = arith.constant 1.280000e+02 : f32
    %117 = vector.broadcast %cst_45 : f32 to vector<8x1xf32>
    %118 = arith.divf %116, %117 : vector<8x1xf32>
    %119 = vector.broadcast %118 : vector<8x1xf32> to vector<8x128xf32>
    %120 = arith.subf %114, %119 : vector<8x128xf32>
    %121 = arith.mulf %120, %120 : vector<8x128xf32>
    %cst_46 = arith.constant dense<0.000000e+00> : vector<8xf32>
    %122 = vector.multi_reduction <add>, %121, %cst_46 [1] : vector<8x128xf32> to vector<8xf32>
    %123 = vector.shape_cast %122 : vector<8xf32> to vector<8x1xf32>
    %cst_47 = arith.constant 1.280000e+02 : f32
    %124 = vector.broadcast %cst_47 : f32 to vector<8x1xf32>
    %125 = arith.divf %123, %124 : vector<8x1xf32>
    %cst_48 = arith.constant 9.99999974E-6 : f32
    %126 = vector.broadcast %cst_48 : f32 to vector<8x1xf32>
    %127 = arith.addf %125, %126 : vector<8x1xf32>
    %128 = math.rsqrt %127 : vector<8x1xf32>
    %129 = vector.broadcast %128 : vector<8x1xf32> to vector<8x128xf32>
    %130 = arith.mulf %120, %129 : vector<8x128xf32>
    %131 = vector.extract_strided_slice %109 {offsets = [1, 0], sizes = [1, 128], strides = [1, 1]} : vector<3x128xf32> to vector<1x128xf32>
    %132 = vector.broadcast %131 : vector<1x128xf32> to vector<8x128xf32>
    %133 = arith.mulf %130, %132 : vector<8x128xf32>
    %134 = vector.extract_strided_slice %109 {offsets = [2, 0], sizes = [1, 128], strides = [1, 1]} : vector<3x128xf32> to vector<1x128xf32>
    %135 = vector.broadcast %134 : vector<1x128xf32> to vector<8x128xf32>
    %136 = arith.addf %133, %135 : vector<8x128xf32>
    %cst_49 = arith.constant 5.000000e-01 : f32
    %137 = vector.broadcast %cst_49 : f32 to vector<8x128xf32>
    %138 = arith.mulf %137, %136 : vector<8x128xf32>
    %cst_50 = arith.constant 0.707106769 : f32
    %139 = vector.broadcast %cst_50 : f32 to vector<8x128xf32>
    %140 = arith.mulf %136, %139 : vector<8x128xf32>
    %141 = math.erf %140 : vector<8x128xf32>
    %cst_51 = arith.constant 1.000000e+00 : f32
    %142 = vector.broadcast %cst_51 : f32 to vector<8x128xf32>
    %143 = arith.addf %142, %141 : vector<8x128xf32>
    %144 = arith.mulf %138, %143 : vector<8x128xf32>
    %145 = arith.addf %72, %144 : vector<8x128xf32>
    %c0_52 = arith.constant 0 : index
    %c0_53 = arith.constant 0 : index
    %146 = vector.load %arg6[%c0_52, %c0_53] : memref<3x128xf32, #tpu.memory_space<vmem>>, vector<3x128xf32>
    %c0_54 = arith.constant 0 : index
    %c0_55 = arith.constant 0 : index
    %147 = vector.load %arg5[%c0_54, %c0_55] : memref<128x128xf32, #tpu.memory_space<vmem>>, vector<128x128xf32>
    %cst_56 = arith.constant dense<0.000000e+00> : vector<8x128xf32>
    %148 = tpu.matmul %145, %147, %cst_56 {dimension_numbers = #tpu.dot_dimension_numbers<[1], [0], [0], [1], [0, 0, 1, 1], [], []>} : vector<8x128xf32>, vector<128x128xf32>, vector<8x128xf32> -> vector<8x128xf32>
    %149 = vector.extract_strided_slice %146 {offsets = [0, 0], sizes = [1, 128], strides = [1, 1]} : vector<3x128xf32> to vector<1x128xf32>
    %150 = vector.broadcast %149 : vector<1x128xf32> to vector<8x128xf32>
    %151 = arith.addf %148, %150 : vector<8x128xf32>
    %cst_57 = arith.constant dense<0.000000e+00> : vector<8xf32>
    %152 = vector.multi_reduction <add>, %151, %cst_57 [1] : vector<8x128xf32> to vector<8xf32>
    %153 = vector.shape_cast %152 : vector<8xf32> to vector<8x1xf32>
    %cst_58 = arith.constant 1.280000e+02 : f32
    %154 = vector.broadcast %cst_58 : f32 to vector<8x1xf32>
    %155 = arith.divf %153, %154 : vector<8x1xf32>
    %156 = vector.broadcast %155 : vector<8x1xf32> to vector<8x128xf32>
    %157 = arith.subf %151, %156 : vector<8x128xf32>
    %158 = arith.mulf %157, %157 : vector<8x128xf32>
    %cst_59 = arith.constant dense<0.000000e+00> : vector<8xf32>
    %159 = vector.multi_reduction <add>, %158, %cst_59 [1] : vector<8x128xf32> to vector<8xf32>
    %160 = vector.shape_cast %159 : vector<8xf32> to vector<8x1xf32>
    %cst_60 = arith.constant 1.280000e+02 : f32
    %161 = vector.broadcast %cst_60 : f32 to vector<8x1xf32>
    %162 = arith.divf %160, %161 : vector<8x1xf32>
    %cst_61 = arith.constant 9.99999974E-6 : f32
    %163 = vector.broadcast %cst_61 : f32 to vector<8x1xf32>
    %164 = arith.addf %162, %163 : vector<8x1xf32>
    %165 = math.rsqrt %164 : vector<8x1xf32>
    %166 = vector.broadcast %165 : vector<8x1xf32> to vector<8x128xf32>
    %167 = arith.mulf %157, %166 : vector<8x128xf32>
    %168 = vector.extract_strided_slice %146 {offsets = [1, 0], sizes = [1, 128], strides = [1, 1]} : vector<3x128xf32> to vector<1x128xf32>
    %169 = vector.broadcast %168 : vector<1x128xf32> to vector<8x128xf32>
    %170 = arith.mulf %167, %169 : vector<8x128xf32>
    %171 = vector.extract_strided_slice %146 {offsets = [2, 0], sizes = [1, 128], strides = [1, 1]} : vector<3x128xf32> to vector<1x128xf32>
    %172 = vector.broadcast %171 : vector<1x128xf32> to vector<8x128xf32>
    %173 = arith.addf %170, %172 : vector<8x128xf32>
    %cst_62 = arith.constant 5.000000e-01 : f32
    %174 = vector.broadcast %cst_62 : f32 to vector<8x128xf32>
    %175 = arith.mulf %174, %173 : vector<8x128xf32>
    %cst_63 = arith.constant 0.707106769 : f32
    %176 = vector.broadcast %cst_63 : f32 to vector<8x128xf32>
    %177 = arith.mulf %173, %176 : vector<8x128xf32>
    %178 = math.erf %177 : vector<8x128xf32>
    %cst_64 = arith.constant 1.000000e+00 : f32
    %179 = vector.broadcast %cst_64 : f32 to vector<8x128xf32>
    %180 = arith.addf %179, %178 : vector<8x128xf32>
    %181 = arith.mulf %175, %180 : vector<8x128xf32>
    %c0_65 = arith.constant 0 : index
    %c0_66 = arith.constant 0 : index
    %182 = vector.load %arg8[%c0_65, %c0_66] : memref<3x128xf32, #tpu.memory_space<vmem>>, vector<3x128xf32>
    %c0_67 = arith.constant 0 : index
    %c0_68 = arith.constant 0 : index
    %183 = vector.load %arg7[%c0_67, %c0_68] : memref<128x128xf32, #tpu.memory_space<vmem>>, vector<128x128xf32>
    %cst_69 = arith.constant dense<0.000000e+00> : vector<8x128xf32>
    %184 = tpu.matmul %181, %183, %cst_69 {dimension_numbers = #tpu.dot_dimension_numbers<[1], [0], [0], [1], [0, 0, 1, 1], [], []>} : vector<8x128xf32>, vector<128x128xf32>, vector<8x128xf32> -> vector<8x128xf32>
    %185 = vector.extract_strided_slice %182 {offsets = [0, 0], sizes = [1, 128], strides = [1, 1]} : vector<3x128xf32> to vector<1x128xf32>
    %186 = vector.broadcast %185 : vector<1x128xf32> to vector<8x128xf32>
    %187 = arith.addf %184, %186 : vector<8x128xf32>
    %cst_70 = arith.constant dense<0.000000e+00> : vector<8xf32>
    %188 = vector.multi_reduction <add>, %187, %cst_70 [1] : vector<8x128xf32> to vector<8xf32>
    %189 = vector.shape_cast %188 : vector<8xf32> to vector<8x1xf32>
    %cst_71 = arith.constant 1.280000e+02 : f32
    %190 = vector.broadcast %cst_71 : f32 to vector<8x1xf32>
    %191 = arith.divf %189, %190 : vector<8x1xf32>
    %192 = vector.broadcast %191 : vector<8x1xf32> to vector<8x128xf32>
    %193 = arith.subf %187, %192 : vector<8x128xf32>
    %194 = arith.mulf %193, %193 : vector<8x128xf32>
    %cst_72 = arith.constant dense<0.000000e+00> : vector<8xf32>
    %195 = vector.multi_reduction <add>, %194, %cst_72 [1] : vector<8x128xf32> to vector<8xf32>
    %196 = vector.shape_cast %195 : vector<8xf32> to vector<8x1xf32>
    %cst_73 = arith.constant 1.280000e+02 : f32
    %197 = vector.broadcast %cst_73 : f32 to vector<8x1xf32>
    %198 = arith.divf %196, %197 : vector<8x1xf32>
    %cst_74 = arith.constant 9.99999974E-6 : f32
    %199 = vector.broadcast %cst_74 : f32 to vector<8x1xf32>
    %200 = arith.addf %198, %199 : vector<8x1xf32>
    %201 = math.rsqrt %200 : vector<8x1xf32>
    %202 = vector.broadcast %201 : vector<8x1xf32> to vector<8x128xf32>
    %203 = arith.mulf %193, %202 : vector<8x128xf32>
    %204 = vector.extract_strided_slice %182 {offsets = [1, 0], sizes = [1, 128], strides = [1, 1]} : vector<3x128xf32> to vector<1x128xf32>
    %205 = vector.broadcast %204 : vector<1x128xf32> to vector<8x128xf32>
    %206 = arith.mulf %203, %205 : vector<8x128xf32>
    %207 = vector.extract_strided_slice %182 {offsets = [2, 0], sizes = [1, 128], strides = [1, 1]} : vector<3x128xf32> to vector<1x128xf32>
    %208 = vector.broadcast %207 : vector<1x128xf32> to vector<8x128xf32>
    %209 = arith.addf %206, %208 : vector<8x128xf32>
    %cst_75 = arith.constant 5.000000e-01 : f32
    %210 = vector.broadcast %cst_75 : f32 to vector<8x128xf32>
    %211 = arith.mulf %210, %209 : vector<8x128xf32>
    %cst_76 = arith.constant 0.707106769 : f32
    %212 = vector.broadcast %cst_76 : f32 to vector<8x128xf32>
    %213 = arith.mulf %209, %212 : vector<8x128xf32>
    %214 = math.erf %213 : vector<8x128xf32>
    %cst_77 = arith.constant 1.000000e+00 : f32
    %215 = vector.broadcast %cst_77 : f32 to vector<8x128xf32>
    %216 = arith.addf %215, %214 : vector<8x128xf32>
    %217 = arith.mulf %211, %216 : vector<8x128xf32>
    %218 = arith.addf %145, %217 : vector<8x128xf32>
    %c0_78 = arith.constant 0 : index
    %c0_79 = arith.constant 0 : index
    %219 = vector.load %arg6[%c0_78, %c0_79] : memref<3x128xf32, #tpu.memory_space<vmem>>, vector<3x128xf32>
    %c0_80 = arith.constant 0 : index
    %c0_81 = arith.constant 0 : index
    %220 = vector.load %arg5[%c0_80, %c0_81] : memref<128x128xf32, #tpu.memory_space<vmem>>, vector<128x128xf32>
    %cst_82 = arith.constant dense<0.000000e+00> : vector<8x128xf32>
    %221 = tpu.matmul %218, %220, %cst_82 {dimension_numbers = #tpu.dot_dimension_numbers<[1], [0], [0], [1], [0, 0, 1, 1], [], []>} : vector<8x128xf32>, vector<128x128xf32>, vector<8x128xf32> -> vector<8x128xf32>
    %222 = vector.extract_strided_slice %219 {offsets = [0, 0], sizes = [1, 128], strides = [1, 1]} : vector<3x128xf32> to vector<1x128xf32>
    %223 = vector.broadcast %222 : vector<1x128xf32> to vector<8x128xf32>
    %224 = arith.addf %221, %223 : vector<8x128xf32>
    %cst_83 = arith.constant dense<0.000000e+00> : vector<8xf32>
    %225 = vector.multi_reduction <add>, %224, %cst_83 [1] : vector<8x128xf32> to vector<8xf32>
    %226 = vector.shape_cast %225 : vector<8xf32> to vector<8x1xf32>
    %cst_84 = arith.constant 1.280000e+02 : f32
    %227 = vector.broadcast %cst_84 : f32 to vector<8x1xf32>
    %228 = arith.divf %226, %227 : vector<8x1xf32>
    %229 = vector.broadcast %228 : vector<8x1xf32> to vector<8x128xf32>
    %230 = arith.subf %224, %229 : vector<8x128xf32>
    %231 = arith.mulf %230, %230 : vector<8x128xf32>
    %cst_85 = arith.constant dense<0.000000e+00> : vector<8xf32>
    %232 = vector.multi_reduction <add>, %231, %cst_85 [1] : vector<8x128xf32> to vector<8xf32>
    %233 = vector.shape_cast %232 : vector<8xf32> to vector<8x1xf32>
    %cst_86 = arith.constant 1.280000e+02 : f32
    %234 = vector.broadcast %cst_86 : f32 to vector<8x1xf32>
    %235 = arith.divf %233, %234 : vector<8x1xf32>
    %cst_87 = arith.constant 9.99999974E-6 : f32
    %236 = vector.broadcast %cst_87 : f32 to vector<8x1xf32>
    %237 = arith.addf %235, %236 : vector<8x1xf32>
    %238 = math.rsqrt %237 : vector<8x1xf32>
    %239 = vector.broadcast %238 : vector<8x1xf32> to vector<8x128xf32>
    %240 = arith.mulf %230, %239 : vector<8x128xf32>
    %241 = vector.extract_strided_slice %219 {offsets = [1, 0], sizes = [1, 128], strides = [1, 1]} : vector<3x128xf32> to vector<1x128xf32>
    %242 = vector.broadcast %241 : vector<1x128xf32> to vector<8x128xf32>
    %243 = arith.mulf %240, %242 : vector<8x128xf32>
    %244 = vector.extract_strided_slice %219 {offsets = [2, 0], sizes = [1, 128], strides = [1, 1]} : vector<3x128xf32> to vector<1x128xf32>
    %245 = vector.broadcast %244 : vector<1x128xf32> to vector<8x128xf32>
    %246 = arith.addf %243, %245 : vector<8x128xf32>
    %cst_88 = arith.constant 5.000000e-01 : f32
    %247 = vector.broadcast %cst_88 : f32 to vector<8x128xf32>
    %248 = arith.mulf %247, %246 : vector<8x128xf32>
    %cst_89 = arith.constant 0.707106769 : f32
    %249 = vector.broadcast %cst_89 : f32 to vector<8x128xf32>
    %250 = arith.mulf %246, %249 : vector<8x128xf32>
    %251 = math.erf %250 : vector<8x128xf32>
    %cst_90 = arith.constant 1.000000e+00 : f32
    %252 = vector.broadcast %cst_90 : f32 to vector<8x128xf32>
    %253 = arith.addf %252, %251 : vector<8x128xf32>
    %254 = arith.mulf %248, %253 : vector<8x128xf32>
    %c0_91 = arith.constant 0 : index
    %c0_92 = arith.constant 0 : index
    %255 = vector.load %arg8[%c0_91, %c0_92] : memref<3x128xf32, #tpu.memory_space<vmem>>, vector<3x128xf32>
    %c0_93 = arith.constant 0 : index
    %c0_94 = arith.constant 0 : index
    %256 = vector.load %arg7[%c0_93, %c0_94] : memref<128x128xf32, #tpu.memory_space<vmem>>, vector<128x128xf32>
    %cst_95 = arith.constant dense<0.000000e+00> : vector<8x128xf32>
    %257 = tpu.matmul %254, %256, %cst_95 {dimension_numbers = #tpu.dot_dimension_numbers<[1], [0], [0], [1], [0, 0, 1, 1], [], []>} : vector<8x128xf32>, vector<128x128xf32>, vector<8x128xf32> -> vector<8x128xf32>
    %258 = vector.extract_strided_slice %255 {offsets = [0, 0], sizes = [1, 128], strides = [1, 1]} : vector<3x128xf32> to vector<1x128xf32>
    %259 = vector.broadcast %258 : vector<1x128xf32> to vector<8x128xf32>
    %260 = arith.addf %257, %259 : vector<8x128xf32>
    %cst_96 = arith.constant dense<0.000000e+00> : vector<8xf32>
    %261 = vector.multi_reduction <add>, %260, %cst_96 [1] : vector<8x128xf32> to vector<8xf32>
    %262 = vector.shape_cast %261 : vector<8xf32> to vector<8x1xf32>
    %cst_97 = arith.constant 1.280000e+02 : f32
    %263 = vector.broadcast %cst_97 : f32 to vector<8x1xf32>
    %264 = arith.divf %262, %263 : vector<8x1xf32>
    %265 = vector.broadcast %264 : vector<8x1xf32> to vector<8x128xf32>
    %266 = arith.subf %260, %265 : vector<8x128xf32>
    %267 = arith.mulf %266, %266 : vector<8x128xf32>
    %cst_98 = arith.constant dense<0.000000e+00> : vector<8xf32>
    %268 = vector.multi_reduction <add>, %267, %cst_98 [1] : vector<8x128xf32> to vector<8xf32>
    %269 = vector.shape_cast %268 : vector<8xf32> to vector<8x1xf32>
    %cst_99 = arith.constant 1.280000e+02 : f32
    %270 = vector.broadcast %cst_99 : f32 to vector<8x1xf32>
    %271 = arith.divf %269, %270 : vector<8x1xf32>
    %cst_100 = arith.constant 9.99999974E-6 : f32
    %272 = vector.broadcast %cst_100 : f32 to vector<8x1xf32>
    %273 = arith.addf %271, %272 : vector<8x1xf32>
    %274 = math.rsqrt %273 : vector<8x1xf32>
    %275 = vector.broadcast %274 : vector<8x1xf32> to vector<8x128xf32>
    %276 = arith.mulf %266, %275 : vector<8x128xf32>
    %277 = vector.extract_strided_slice %255 {offsets = [1, 0], sizes = [1, 128], strides = [1, 1]} : vector<3x128xf32> to vector<1x128xf32>
    %278 = vector.broadcast %277 : vector<1x128xf32> to vector<8x128xf32>
    %279 = arith.mulf %276, %278 : vector<8x128xf32>
    %280 = vector.extract_strided_slice %255 {offsets = [2, 0], sizes = [1, 128], strides = [1, 1]} : vector<3x128xf32> to vector<1x128xf32>
    %281 = vector.broadcast %280 : vector<1x128xf32> to vector<8x128xf32>
    %282 = arith.addf %279, %281 : vector<8x128xf32>
    %cst_101 = arith.constant 5.000000e-01 : f32
    %283 = vector.broadcast %cst_101 : f32 to vector<8x128xf32>
    %284 = arith.mulf %283, %282 : vector<8x128xf32>
    %cst_102 = arith.constant 0.707106769 : f32
    %285 = vector.broadcast %cst_102 : f32 to vector<8x128xf32>
    %286 = arith.mulf %282, %285 : vector<8x128xf32>
    %287 = math.erf %286 : vector<8x128xf32>
    %cst_103 = arith.constant 1.000000e+00 : f32
    %288 = vector.broadcast %cst_103 : f32 to vector<8x128xf32>
    %289 = arith.addf %288, %287 : vector<8x128xf32>
    %290 = arith.mulf %284, %289 : vector<8x128xf32>
    %291 = arith.addf %218, %290 : vector<8x128xf32>
    %c0_104 = arith.constant 0 : index
    %c0_105 = arith.constant 0 : index
    %292 = vector.load %arg6[%c0_104, %c0_105] : memref<3x128xf32, #tpu.memory_space<vmem>>, vector<3x128xf32>
    %c0_106 = arith.constant 0 : index
    %c0_107 = arith.constant 0 : index
    %293 = vector.load %arg5[%c0_106, %c0_107] : memref<128x128xf32, #tpu.memory_space<vmem>>, vector<128x128xf32>
    %cst_108 = arith.constant dense<0.000000e+00> : vector<8x128xf32>
    %294 = tpu.matmul %291, %293, %cst_108 {dimension_numbers = #tpu.dot_dimension_numbers<[1], [0], [0], [1], [0, 0, 1, 1], [], []>} : vector<8x128xf32>, vector<128x128xf32>, vector<8x128xf32> -> vector<8x128xf32>
    %295 = vector.extract_strided_slice %292 {offsets = [0, 0], sizes = [1, 128], strides = [1, 1]} : vector<3x128xf32> to vector<1x128xf32>
    %296 = vector.broadcast %295 : vector<1x128xf32> to vector<8x128xf32>
    %297 = arith.addf %294, %296 : vector<8x128xf32>
    %cst_109 = arith.constant dense<0.000000e+00> : vector<8xf32>
    %298 = vector.multi_reduction <add>, %297, %cst_109 [1] : vector<8x128xf32> to vector<8xf32>
    %299 = vector.shape_cast %298 : vector<8xf32> to vector<8x1xf32>
    %cst_110 = arith.constant 1.280000e+02 : f32
    %300 = vector.broadcast %cst_110 : f32 to vector<8x1xf32>
    %301 = arith.divf %299, %300 : vector<8x1xf32>
    %302 = vector.broadcast %301 : vector<8x1xf32> to vector<8x128xf32>
    %303 = arith.subf %297, %302 : vector<8x128xf32>
    %304 = arith.mulf %303, %303 : vector<8x128xf32>
    %cst_111 = arith.constant dense<0.000000e+00> : vector<8xf32>
    %305 = vector.multi_reduction <add>, %304, %cst_111 [1] : vector<8x128xf32> to vector<8xf32>
    %306 = vector.shape_cast %305 : vector<8xf32> to vector<8x1xf32>
    %cst_112 = arith.constant 1.280000e+02 : f32
    %307 = vector.broadcast %cst_112 : f32 to vector<8x1xf32>
    %308 = arith.divf %306, %307 : vector<8x1xf32>
    %cst_113 = arith.constant 9.99999974E-6 : f32
    %309 = vector.broadcast %cst_113 : f32 to vector<8x1xf32>
    %310 = arith.addf %308, %309 : vector<8x1xf32>
    %311 = math.rsqrt %310 : vector<8x1xf32>
    %312 = vector.broadcast %311 : vector<8x1xf32> to vector<8x128xf32>
    %313 = arith.mulf %303, %312 : vector<8x128xf32>
    %314 = vector.extract_strided_slice %292 {offsets = [1, 0], sizes = [1, 128], strides = [1, 1]} : vector<3x128xf32> to vector<1x128xf32>
    %315 = vector.broadcast %314 : vector<1x128xf32> to vector<8x128xf32>
    %316 = arith.mulf %313, %315 : vector<8x128xf32>
    %317 = vector.extract_strided_slice %292 {offsets = [2, 0], sizes = [1, 128], strides = [1, 1]} : vector<3x128xf32> to vector<1x128xf32>
    %318 = vector.broadcast %317 : vector<1x128xf32> to vector<8x128xf32>
    %319 = arith.addf %316, %318 : vector<8x128xf32>
    %cst_114 = arith.constant 5.000000e-01 : f32
    %320 = vector.broadcast %cst_114 : f32 to vector<8x128xf32>
    %321 = arith.mulf %320, %319 : vector<8x128xf32>
    %cst_115 = arith.constant 0.707106769 : f32
    %322 = vector.broadcast %cst_115 : f32 to vector<8x128xf32>
    %323 = arith.mulf %319, %322 : vector<8x128xf32>
    %324 = math.erf %323 : vector<8x128xf32>
    %cst_116 = arith.constant 1.000000e+00 : f32
    %325 = vector.broadcast %cst_116 : f32 to vector<8x128xf32>
    %326 = arith.addf %325, %324 : vector<8x128xf32>
    %327 = arith.mulf %321, %326 : vector<8x128xf32>
    %c0_117 = arith.constant 0 : index
    %c0_118 = arith.constant 0 : index
    %328 = vector.load %arg8[%c0_117, %c0_118] : memref<3x128xf32, #tpu.memory_space<vmem>>, vector<3x128xf32>
    %c0_119 = arith.constant 0 : index
    %c0_120 = arith.constant 0 : index
    %329 = vector.load %arg7[%c0_119, %c0_120] : memref<128x128xf32, #tpu.memory_space<vmem>>, vector<128x128xf32>
    %cst_121 = arith.constant dense<0.000000e+00> : vector<8x128xf32>
    %330 = tpu.matmul %327, %329, %cst_121 {dimension_numbers = #tpu.dot_dimension_numbers<[1], [0], [0], [1], [0, 0, 1, 1], [], []>} : vector<8x128xf32>, vector<128x128xf32>, vector<8x128xf32> -> vector<8x128xf32>
    %331 = vector.extract_strided_slice %328 {offsets = [0, 0], sizes = [1, 128], strides = [1, 1]} : vector<3x128xf32> to vector<1x128xf32>
    %332 = vector.broadcast %331 : vector<1x128xf32> to vector<8x128xf32>
    %333 = arith.addf %330, %332 : vector<8x128xf32>
    %cst_122 = arith.constant dense<0.000000e+00> : vector<8xf32>
    %334 = vector.multi_reduction <add>, %333, %cst_122 [1] : vector<8x128xf32> to vector<8xf32>
    %335 = vector.shape_cast %334 : vector<8xf32> to vector<8x1xf32>
    %cst_123 = arith.constant 1.280000e+02 : f32
    %336 = vector.broadcast %cst_123 : f32 to vector<8x1xf32>
    %337 = arith.divf %335, %336 : vector<8x1xf32>
    %338 = vector.broadcast %337 : vector<8x1xf32> to vector<8x128xf32>
    %339 = arith.subf %333, %338 : vector<8x128xf32>
    %340 = arith.mulf %339, %339 : vector<8x128xf32>
    %cst_124 = arith.constant dense<0.000000e+00> : vector<8xf32>
    %341 = vector.multi_reduction <add>, %340, %cst_124 [1] : vector<8x128xf32> to vector<8xf32>
    %342 = vector.shape_cast %341 : vector<8xf32> to vector<8x1xf32>
    %cst_125 = arith.constant 1.280000e+02 : f32
    %343 = vector.broadcast %cst_125 : f32 to vector<8x1xf32>
    %344 = arith.divf %342, %343 : vector<8x1xf32>
    %cst_126 = arith.constant 9.99999974E-6 : f32
    %345 = vector.broadcast %cst_126 : f32 to vector<8x1xf32>
    %346 = arith.addf %344, %345 : vector<8x1xf32>
    %347 = math.rsqrt %346 : vector<8x1xf32>
    %348 = vector.broadcast %347 : vector<8x1xf32> to vector<8x128xf32>
    %349 = arith.mulf %339, %348 : vector<8x128xf32>
    %350 = vector.extract_strided_slice %328 {offsets = [1, 0], sizes = [1, 128], strides = [1, 1]} : vector<3x128xf32> to vector<1x128xf32>
    %351 = vector.broadcast %350 : vector<1x128xf32> to vector<8x128xf32>
    %352 = arith.mulf %349, %351 : vector<8x128xf32>
    %353 = vector.extract_strided_slice %328 {offsets = [2, 0], sizes = [1, 128], strides = [1, 1]} : vector<3x128xf32> to vector<1x128xf32>
    %354 = vector.broadcast %353 : vector<1x128xf32> to vector<8x128xf32>
    %355 = arith.addf %352, %354 : vector<8x128xf32>
    %cst_127 = arith.constant 5.000000e-01 : f32
    %356 = vector.broadcast %cst_127 : f32 to vector<8x128xf32>
    %357 = arith.mulf %356, %355 : vector<8x128xf32>
    %cst_128 = arith.constant 0.707106769 : f32
    %358 = vector.broadcast %cst_128 : f32 to vector<8x128xf32>
    %359 = arith.mulf %355, %358 : vector<8x128xf32>
    %360 = math.erf %359 : vector<8x128xf32>
    %cst_129 = arith.constant 1.000000e+00 : f32
    %361 = vector.broadcast %cst_129 : f32 to vector<8x128xf32>
    %362 = arith.addf %361, %360 : vector<8x128xf32>
    %363 = arith.mulf %357, %362 : vector<8x128xf32>
    %364 = arith.addf %291, %363 : vector<8x128xf32>
    %c0_130 = arith.constant 0 : index
    %c0_131 = arith.constant 0 : index
    %365 = vector.load %arg10[%c0_130, %c0_131] : memref<3x64xf32, #tpu.memory_space<vmem>>, vector<3x64xf32>
    %c0_132 = arith.constant 0 : index
    %c0_133 = arith.constant 0 : index
    %366 = vector.load %arg9[%c0_132, %c0_133] : memref<128x64xf32, #tpu.memory_space<vmem>>, vector<128x64xf32>
    %cst_134 = arith.constant dense<0.000000e+00> : vector<8x64xf32>
    %367 = tpu.matmul %364, %366, %cst_134 {dimension_numbers = #tpu.dot_dimension_numbers<[1], [0], [0], [1], [0, 0, 1, 1], [], []>} : vector<8x128xf32>, vector<128x64xf32>, vector<8x64xf32> -> vector<8x64xf32>
    %368 = vector.extract_strided_slice %365 {offsets = [0, 0], sizes = [1, 64], strides = [1, 1]} : vector<3x64xf32> to vector<1x64xf32>
    %369 = vector.broadcast %368 : vector<1x64xf32> to vector<8x64xf32>
    %370 = arith.addf %367, %369 : vector<8x64xf32>
    %cst_135 = arith.constant dense<0.000000e+00> : vector<8xf32>
    %371 = vector.multi_reduction <add>, %370, %cst_135 [1] : vector<8x64xf32> to vector<8xf32>
    %372 = vector.shape_cast %371 : vector<8xf32> to vector<8x1xf32>
    %cst_136 = arith.constant 6.400000e+01 : f32
    %373 = vector.broadcast %cst_136 : f32 to vector<8x1xf32>
    %374 = arith.divf %372, %373 : vector<8x1xf32>
    %375 = vector.broadcast %374 : vector<8x1xf32> to vector<8x64xf32>
    %376 = arith.subf %370, %375 : vector<8x64xf32>
    %377 = arith.mulf %376, %376 : vector<8x64xf32>
    %cst_137 = arith.constant dense<0.000000e+00> : vector<8xf32>
    %378 = vector.multi_reduction <add>, %377, %cst_137 [1] : vector<8x64xf32> to vector<8xf32>
    %379 = vector.shape_cast %378 : vector<8xf32> to vector<8x1xf32>
    %cst_138 = arith.constant 6.400000e+01 : f32
    %380 = vector.broadcast %cst_138 : f32 to vector<8x1xf32>
    %381 = arith.divf %379, %380 : vector<8x1xf32>
    %cst_139 = arith.constant 9.99999974E-6 : f32
    %382 = vector.broadcast %cst_139 : f32 to vector<8x1xf32>
    %383 = arith.addf %381, %382 : vector<8x1xf32>
    %384 = math.rsqrt %383 : vector<8x1xf32>
    %385 = vector.broadcast %384 : vector<8x1xf32> to vector<8x64xf32>
    %386 = arith.mulf %376, %385 : vector<8x64xf32>
    %387 = vector.extract_strided_slice %365 {offsets = [1, 0], sizes = [1, 64], strides = [1, 1]} : vector<3x64xf32> to vector<1x64xf32>
    %388 = vector.broadcast %387 : vector<1x64xf32> to vector<8x64xf32>
    %389 = arith.mulf %386, %388 : vector<8x64xf32>
    %390 = vector.extract_strided_slice %365 {offsets = [2, 0], sizes = [1, 64], strides = [1, 1]} : vector<3x64xf32> to vector<1x64xf32>
    %391 = vector.broadcast %390 : vector<1x64xf32> to vector<8x64xf32>
    %392 = arith.addf %389, %391 : vector<8x64xf32>
    %cst_140 = arith.constant 5.000000e-01 : f32
    %393 = vector.broadcast %cst_140 : f32 to vector<8x64xf32>
    %394 = arith.mulf %393, %392 : vector<8x64xf32>
    %cst_141 = arith.constant 0.707106769 : f32
    %395 = vector.broadcast %cst_141 : f32 to vector<8x64xf32>
    %396 = arith.mulf %392, %395 : vector<8x64xf32>
    %397 = math.erf %396 : vector<8x64xf32>
    %cst_142 = arith.constant 1.000000e+00 : f32
    %398 = vector.broadcast %cst_142 : f32 to vector<8x64xf32>
    %399 = arith.addf %398, %397 : vector<8x64xf32>
    %400 = arith.mulf %394, %399 : vector<8x64xf32>
    %c0_143 = arith.constant 0 : index
    %c0_144 = arith.constant 0 : index
    %401 = vector.load %arg12[%c0_143, %c0_144] : memref<3x32xf32, #tpu.memory_space<vmem>>, vector<3x32xf32>
    %c0_145 = arith.constant 0 : index
    %c0_146 = arith.constant 0 : index
    %402 = vector.load %arg11[%c0_145, %c0_146] : memref<64x32xf32, #tpu.memory_space<vmem>>, vector<64x32xf32>
    %cst_147 = arith.constant dense<0.000000e+00> : vector<8x32xf32>
    %403 = tpu.matmul %400, %402, %cst_147 {dimension_numbers = #tpu.dot_dimension_numbers<[1], [0], [0], [1], [0, 0, 1, 1], [], []>} : vector<8x64xf32>, vector<64x32xf32>, vector<8x32xf32> -> vector<8x32xf32>
    %404 = vector.extract_strided_slice %401 {offsets = [0, 0], sizes = [1, 32], strides = [1, 1]} : vector<3x32xf32> to vector<1x32xf32>
    %405 = vector.broadcast %404 : vector<1x32xf32> to vector<8x32xf32>
    %406 = arith.addf %403, %405 : vector<8x32xf32>
    %cst_148 = arith.constant dense<0.000000e+00> : vector<8xf32>
    %407 = vector.multi_reduction <add>, %406, %cst_148 [1] : vector<8x32xf32> to vector<8xf32>
    %408 = vector.shape_cast %407 : vector<8xf32> to vector<8x1xf32>
    %cst_149 = arith.constant 3.200000e+01 : f32
    %409 = vector.broadcast %cst_149 : f32 to vector<8x1xf32>
    %410 = arith.divf %408, %409 : vector<8x1xf32>
    %411 = vector.broadcast %410 : vector<8x1xf32> to vector<8x32xf32>
    %412 = arith.subf %406, %411 : vector<8x32xf32>
    %413 = arith.mulf %412, %412 : vector<8x32xf32>
    %cst_150 = arith.constant dense<0.000000e+00> : vector<8xf32>
    %414 = vector.multi_reduction <add>, %413, %cst_150 [1] : vector<8x32xf32> to vector<8xf32>
    %415 = vector.shape_cast %414 : vector<8xf32> to vector<8x1xf32>
    %cst_151 = arith.constant 3.200000e+01 : f32
    %416 = vector.broadcast %cst_151 : f32 to vector<8x1xf32>
    %417 = arith.divf %415, %416 : vector<8x1xf32>
    %cst_152 = arith.constant 9.99999974E-6 : f32
    %418 = vector.broadcast %cst_152 : f32 to vector<8x1xf32>
    %419 = arith.addf %417, %418 : vector<8x1xf32>
    %420 = math.rsqrt %419 : vector<8x1xf32>
    %421 = vector.broadcast %420 : vector<8x1xf32> to vector<8x32xf32>
    %422 = arith.mulf %412, %421 : vector<8x32xf32>
    %423 = vector.extract_strided_slice %401 {offsets = [1, 0], sizes = [1, 32], strides = [1, 1]} : vector<3x32xf32> to vector<1x32xf32>
    %424 = vector.broadcast %423 : vector<1x32xf32> to vector<8x32xf32>
    %425 = arith.mulf %422, %424 : vector<8x32xf32>
    %426 = vector.extract_strided_slice %401 {offsets = [2, 0], sizes = [1, 32], strides = [1, 1]} : vector<3x32xf32> to vector<1x32xf32>
    %427 = vector.broadcast %426 : vector<1x32xf32> to vector<8x32xf32>
    %428 = arith.addf %425, %427 : vector<8x32xf32>
    %c0_153 = arith.constant 0 : index
    %c0_154 = arith.constant 0 : index
    %429 = vector.load %arg13[%c0_153, %c0_154] : memref<8x32xf32, #tpu.memory_space<vmem>>, vector<8x32xf32>
    tpu.vector_store %arg13[%c0_153, %c0_154], %428 {strides = array<i32>} : memref<8x32xf32, #tpu.memory_space<vmem>>, vector<8x32xf32>,
    return
  }
}

</mosaic_0001>

<bundles_post_ra>
// kernel: tpu_custom_call.1
= control target key start
LH: loop header
LB: loop body
LE: loop exit
PB: predicated region body
PF: predicated region fallthrough
CT: control target
= control target key end

     0   :  { %18 = vsyncpa [#allocation3], 0  ;;  %s2720_s0 = inlined_call_operand.vmem [shape: f32[8,16], index: 0, kind: input, shape index: {}]   ;;  %s2721_s1 = inlined_call_operand.vmem [shape: f32[16,128], index: 1, kind: input, shape index: {}]   ;;  %s2722_s2 = inlined_call_operand.vmem [shape: f32[3,128], index: 2, kind: input, shape index: {}]   ;;  %s2723_s3 = inlined_call_operand.vmem [shape: f32[128,128], index: 3, kind: input, shape index: {}]   ;;  %s2724_s4 = inlined_call_operand.vmem [shape: f32[3,128], index: 4, kind: input, shape index: {}]   ;;  %s2725_s5 = inlined_call_operand.vmem [shape: f32[128,128], index: 5, kind: input, shape index: {}]   ;;  %s2726_s6 = inlined_call_operand.vmem [shape: f32[3,128], index: 6, kind: input, shape index: {}]   ;;  %s2727_s7 = inlined_call_operand.hbm [shape: f32[128,128], index: 7, kind: input, shape index: {}]   ;;  %s2728_s8 = inlined_call_operand.vmem [shape: f32[3,128], index: 8, kind: input, shape index: {}]   ;;  %s2729_s9 = inlined_call_operand.vmem [shape: f32[128,64], index: 9, kind: input, shape index: {}]   ;;  %s2730_s10 = inlined_call_operand.vmem [shape: f32[3,64], index: 10, kind: input, shape index: {}]   ;;  %s2731_s11 = inlined_call_operand.vmem [shape: f32[64,32], index: 11, kind: input, shape index: {}]   ;;  %s2732_s12 = inlined_call_operand.vmem [shape: f32[3,32], index: 12, kind: input, shape index: {}]   ;;  %s2733_s13 = inlined_call_operand.hbm [shape: f32[8,32], index: 13, kind: output, shape index: {}]  }
   0x1   :  { %19 = vsyncpa [#allocation4], 0  ;;  %s1955_s25 = smov [#allocation2]  }
   0x2   :  { %s39_s26 = sshll.u32 %s1955_s25, 4  ;;  %s40_s26 = int_to_ptr.vmem [resolvable:$true] %s39_s26 }
   0x3   :  { %s1919_s27 = scalar_lea.vmem %s40_s26, 2048  ;;  %p1924_p1 = scmp.lt.s32.totalorder %s40_s26, %s40_s26 }
   0x4   :  { %p1920_p0 = scmp.ne.s32.totalorder %s40_s26, %s1919_s27  ;;  %p1925_p2 = scmp.lt.s32.totalorder %s1919_s27, %s1919_s27 }
   0x6   :  { %p1926_p3 = por %p1925_p2, %p1924_p1 }
   0x8   :  { %p1927_p4 = pnand %p1926_p3, %p1920_p0 }
   0xa   :  { %1930 = shalt.err (!%p1927_p4)
}
   0xb   :  { %s1956_s28 = smov 128   ;;  %s1957_s29 = smov 8  }
   0xc   :  { %45 = dma.hbm_to_vmem [thread:$0]  %s2727_s7, 2048, %s40_s26, [#allocation3], %s1956_s28, %s1956_s28, %s1957_s29  }
   0xd   :  { %1951 = dma.done.wait [#allocation3], 2048  }
   0xe   :  { %1952 = vsyncadd [#allocation3], 4294965248  ;;  %v1958_v0 = vmov 0.0   ;;  %vm1959_vm0 = vmmov 0   ;;  %v62_v1 = vld [vmem:[%s2721_s1 + $0x8] sm:$0xff]  ;;  %v61_v2 = vld [vmem:[%s2721_s1] sm:$0xff]  ;;  %v63_v4 = vlaneseq }
   0xf   :  { %1483 = vmatprep.subr.mxu0 %v1958_v0  ;;  %1487 = vmatprep.mubr.msk.f32.mxu0 %vm1959_vm0, %v1958_v0  ;;  %v59_v3 = vld [vmem:[%s2720_s0] sm:$0xff]  ;;  %vm67_vm1 = vcmask 130048   ;;  %v184_v16 = vld [vmem:[%s2723_s3 + $0x78] sm:$0xff]  ;;  %v183_v17 = vld [vmem:[%s2723_s3 + $0x70] sm:$0xff]  ;;  %vm1142_vm2 = vcmask 523264   ;;  %vm1258_vm3 = vcmask 261120  }
  0x10   :  { %1490 = vmatprep.subr.mxu1 %v1958_v0  ;;  %1522 = vmatprep.mubr.msk.f32.mxu1 %vm1959_vm0, %v1958_v0  ;;  %v2053_v5 = vshrl.u32 %v63_v4, 7  ;;  %v2061_v7 = vld [vmem:[%s2722_s2] sm:$0x7]  ;;  %v182_v18 = vld [vmem:[%s2723_s3 + $0x68] sm:$0xff]  ;;  %v180_v20 = vld [vmem:[%s2723_s3 + $0x58] sm:$0xff] }
  0x11   :  { %1484 = vmatpush3.msra.mxu0 %v62_v1  ;;  %1491 = vmatpush3.msra.mxu1 %v184_v16  ;;  %v181_v19 = vld [vmem:[%s2723_s3 + $0x60] sm:$0xff]  ;;  %v179_v21 = vld [vmem:[%s2723_s3 + $0x50] sm:$0xff]  ;;  %v178_v22 = vld [vmem:[%s2723_s3 + $0x48] sm:$0xff] }
  0x12   :  { %1485 = vmatprep.subr.mxu0 %v1958_v0  ;;  %v2056_v6 = vsub.s32 0, %v2053_v5  ;;  %1492 = vmatprep.subr.mxu1 %v1958_v0  ;;  %v177_v23 = vld [vmem:[%s2723_s3 + $0x40] sm:$0xff]  ;;  %v176_v24 = vld [vmem:[%s2723_s3 + $0x38] sm:$0xff]  ;;  %v175_v25 = vld [vmem:[%s2723_s3 + $0x30] sm:$0xff]  ;;  %v2130_v35 = vsub.s32 1, %v2053_v5  ;;  %v2133_v36 = vsub.s32 2, %v2053_v5 }
  0x13   :  { %1486 = vmatpush3.msra.mxu0 %v61_v2  ;;  %1493 = vmatpush3.msra.mxu1 %v183_v17  ;;  %v174_v26 = vld [vmem:[%s2723_s3 + $0x28] sm:$0xff]  ;;  %v173_v27 = vld [vmem:[%s2723_s3 + $0x20] sm:$0xff]  ;;  %v172_v28 = vld [vmem:[%s2723_s3 + $0x18] sm:$0xff] }
  0x14   :  { %1488 = vmatmul.mubr.msk.f32.vlgmr.msra.gmra.mxu0 %vm67_vm1, %v59_v3  ;;  %1525 = vmatprep.subr.mxu0 %v1958_v0  ;;  %v66_v8 = vrot.slane %v2061_v7, %v2056_v6  ;;  %v171_v29 = vld [vmem:[%s2723_s3 + $0x10] sm:$0xff]  ;;  %v170_v30 = vld [vmem:[%s2723_s3 + $0x8] sm:$0xff]  ;;  %v169_v31 = vld [vmem:[%s2723_s3] sm:$0xff]  ;;  %v156_v37 = vrot.slane %v2061_v7, %v2130_v35  ;;  %v161_v39 = vrot.slane %v2061_v7, %v2133_v36 }
  0x15   :  { %1557 = vmatprep.mubr.msk.f32.mxu0 %vm1959_vm0, %v1958_v0  ;;  %1494 = vmatprep.subr.mxu1 %v1958_v0  ;;  %v2144_v48 = vld [vmem:[%s2724_s4] sm:$0x7]  ;;  %v2151_v57 = vld [vmem:[%s2725_s5 + $0x78] sm:$0xff]  ;;  %v2156_v58 = vld [vmem:[%s2725_s5 + $0x70] sm:$0xff] }
  0x16   :  { %1495 = vmatpush3.msra.mxu1 %v182_v18  ;;  %v188_v49 = vrot.slane %v2144_v48, %v2056_v6  ;;  %1526 = vmatpush3.msra.mxu0 %v2151_v57  ;;  %v2163_v59 = vld [vmem:[%s2725_s5 + $0x68] sm:$0xff]  ;;  %v2170_v60 = vld [vmem:[%s2725_s5 + $0x60] sm:$0xff]  ;;  %v2177_v61 = vld [vmem:[%s2725_s5 + $0x58] sm:$0xff]  ;;  %v278_v16 = vrot.slane %v2144_v48, %v2133_v36 }
  0x17   :  { %1496 = vmatprep.subr.mxu1 %v1958_v0  ;;  %1527 = vmatprep.subr.mxu0 %v1958_v0  ;;  %v2184_v62 = vld [vmem:[%s2725_s5 + $0x50] sm:$0xff]  ;;  %v2191_v63 = vld [vmem:[%s2725_s5 + $0x48] sm:$0xff]  ;;  %v2198_v1 = vld [vmem:[%s2725_s5 + $0x40] sm:$0xff] }
  0x18   :  { %1497 = vmatpush3.msra.mxu1 %v181_v19  ;;  %1528 = vmatpush3.msra.mxu0 %v2156_v58  ;;  %v2205_v2 = vld [vmem:[%s2725_s5 + $0x38] sm:$0xff]  ;;  %v2212_v3 = vld [vmem:[%s2725_s5 + $0x30] sm:$0xff]  ;;  %v2219_v4 = vld [vmem:[%s2725_s5 + $0x28] sm:$0xff] }
  0x19   :  { %1498 = vmatprep.subr.mxu1 %v1958_v0  ;;  %1529 = vmatprep.subr.mxu0 %v1958_v0  ;;  %v2226_v5 = vld [vmem:[%s2725_s5 + $0x20] sm:$0xff]  ;;  %v2233_v7 = vld [vmem:[%s2725_s5 + $0x18] sm:$0xff] }
  0x1a   :  { %1499 = vmatpush3.msra.mxu1 %v180_v20  ;;  %1530 = vmatpush3.msra.mxu0 %v2163_v59 }
  0x1b   :  { %1500 = vmatprep.subr.mxu1 %v1958_v0  ;;  %1531 = vmatprep.subr.mxu0 %v1958_v0 }
  0x1c   :  { %1501 = vmatpush3.msra.mxu1 %v179_v21  ;;  %1532 = vmatpush3.msra.mxu0 %v2170_v60 }
  0x1d   :  { %1502 = vmatprep.subr.mxu1 %v1958_v0  ;;  %1533 = vmatprep.subr.mxu0 %v1958_v0 }
  0x1e   :  { %1503 = vmatpush3.msra.mxu1 %v178_v22  ;;  %1534 = vmatpush3.msra.mxu0 %v2177_v61 }
  0x1f   :  { %1504 = vmatprep.subr.mxu1 %v1958_v0  ;;  %1535 = vmatprep.subr.mxu0 %v1958_v0 }
  0x20   :  { %1505 = vmatpush3.msra.mxu1 %v177_v23  ;;  %1536 = vmatpush3.msra.mxu0 %v2184_v62 }
  0x21   :  { %1506 = vmatprep.subr.mxu1 %v1958_v0  ;;  %1537 = vmatprep.subr.mxu0 %v1958_v0 }
  0x22   :  { %1507 = vmatpush3.msra.mxu1 %v176_v24  ;;  %1538 = vmatpush3.msra.mxu0 %v2191_v63 }
  0x23   :  { %1508 = vmatprep.subr.mxu1 %v1958_v0  ;;  %1539 = vmatprep.subr.mxu0 %v1958_v0 }
  0x24   :  { %1509 = vmatpush3.msra.mxu1 %v175_v25  ;;  %1540 = vmatpush3.msra.mxu0 %v2198_v1  ;;  %v2304_v25 = vld [vmem:[%s2726_s6] sm:$0x7] }
  0x25   :  { %1510 = vmatprep.subr.mxu1 %v1958_v0  ;;  %1541 = vmatprep.subr.mxu0 %v1958_v0 }
  0x26   :  { %1511 = vmatpush3.msra.mxu1 %v174_v26  ;;  %1542 = vmatpush3.msra.mxu0 %v2205_v2  ;;  %v2308_v26 = vrot.slane %v2304_v25, %v2056_v6 }
  0x27   :  { %1512 = vmatprep.subr.mxu1 %v1958_v0  ;;  %1543 = vmatprep.subr.mxu0 %v1958_v0 }
  0x28   :  { %1513 = vmatpush3.msra.mxu1 %v173_v27  ;;  %1544 = vmatpush3.msra.mxu0 %v2212_v3 }
  0x29   :  { %1514 = vmatprep.subr.mxu1 %v1958_v0  ;;  %1545 = vmatprep.subr.mxu0 %v1958_v0 }
  0x2a   :  { %1515 = vmatpush3.msra.mxu1 %v172_v28  ;;  %1546 = vmatpush3.msra.mxu0 %v2219_v4 }
  0x2b   :  { %1516 = vmatprep.subr.mxu1 %v1958_v0  ;;  %1547 = vmatprep.subr.mxu0 %v1958_v0 }
  0x2c   :  { %1517 = vmatpush3.msra.mxu1 %v171_v29  ;;  %1548 = vmatpush3.msra.mxu0 %v2226_v5 }
  0x2d   :  { %1518 = vmatprep.subr.mxu1 %v1958_v0  ;;  %1549 = vmatprep.subr.mxu0 %v1958_v0 }
  0x2e   :  { %1519 = vmatpush3.msra.mxu1 %v170_v30  ;;  %1550 = vmatpush3.msra.mxu0 %v2233_v7 }
  0x2f   :  { %1520 = vmatprep.subr.mxu1 %v1958_v0  ;;  %1551 = vmatprep.subr.mxu0 %v1958_v0 }
  0x30   :  { %1521 = vmatpush3.msra.mxu1 %v169_v31 }
  0x31   :  { %1560 = vmatprep.subr.mxu1 %v1958_v0 }
  0xd4   :  { %v137_v9 = vpop.f32.mrf.mxu0 }
  0xd5   :  { %v138_v10 = vadd.f32 %v137_v9, %v66_v8  ;;  %v2240_v8 = vld [vmem:[%s2725_s5 + $0x10] sm:$0xff]  ;;  %v2247_v9 = vld [vmem:[%s2725_s5 + $0x8] sm:$0xff] }
  0xd6   :  { %v1489_v11 = vpop.f32.mrf.mxu0  ;;  %1552 = vmatpush3.msra.mxu0 %v2240_v8 }
  0xd7   :  { %141 = vadd.xlane.f32.xlu0 %v138_v10  ;;  %1553 = vmatprep.subr.mxu0 %v1958_v0 }
  0xd8   :  { %1554 = vmatpush3.msra.mxu0 %v2247_v9 }
  0xd9   :  { %1555 = vmatprep.subr.mxu0 %v1958_v0 }
 0x160   :  { %v142_v12 = vpop.xlane.xlu0 %141 }
 0x161   :  { %v144_v13 = vmul.f32 0.0078125, %v142_v12 }
 0x163   :  { %v145_v14 = vsub.f32 %v138_v10, %v144_v13  ;;  %v2254_v10 = vld [vmem:[%s2725_s5] sm:$0xff] }
 0x164   :  { %1556 = vmatpush3.msra.mxu0 %v2254_v10 }
 0x165   :  { %v146_v15 = vmul.f32 %v145_v14, %v145_v14  ;;  %1595 = vmatprep.subr.mxu0 %v1958_v0 }
 0x167   :  { %147 = vadd.xlane.f32.xlu0 %v146_v15 }
 0x1f0   :  { %v148_v32 = vpop.xlane.xlu0 %147 }
 0x1f1   :  { %v149_v33 = vmul.f32 0.0078125, %v148_v32 }
 0x1f3   :  { %v150_v34 = vadd.f32 1e-05, %v149_v33 }
 0x1f5   :  { %1865 = vrsqrt.f32 %v150_v34  ;;  %v2311_v34 = vld [vmem:[#allocation2 + $0x78] sm:$0xff] }
 0x202   :  { %v1866_v38 = vpop.eup %1865 }
 0x203   :  { %v152_v40 = vmul.f32 %v1866_v38, %v145_v14  ;;  %v273_v14 = vrot.slane %v2144_v48, %v2130_v35  ;;  %v2317_v38 = vld [vmem:[#allocation2 + $0x68] sm:$0xff]  ;;  %v2357_v48 = vld [vmem:[#allocation2 + $0x18] sm:$0xff] }
 0x205   :  { %v157_v41 = vmul.f32 %v156_v37, %v152_v40  ;;  %v2313_v37 = vld [vmem:[#allocation2 + $0x70] sm:$0xff]  ;;  %v2325_v40 = vld [vmem:[#allocation2 + $0x58] sm:$0xff] }
 0x207   :  { %v162_v42 = vadd.f32 %v161_v39, %v157_v41  ;;  %v2321_v39 = vld [vmem:[#allocation2 + $0x60] sm:$0xff]  ;;  %v2329_v41 = vld [vmem:[#allocation2 + $0x50] sm:$0xff] }
 0x209   :  { %v164_v43 = vmul.f32 0.70710677, %v162_v42  ;;  %v163_v45 = vmul.f32 0.5, %v162_v42  ;;  %v2333_v42 = vld [vmem:[#allocation2 + $0x48] sm:$0xff] }
 0x20b   :  { %1867 = verf.f32 %v164_v43  ;;  %v2337_v43 = vld [vmem:[#allocation2 + $0x40] sm:$0xff] }
 0x218   :  { %v1868_v44 = vpop.eup %1867 }
 0x219   :  { %v166_v46 = vadd.f32 1.0, %v1868_v44  ;;  %v2341_v44 = vld [vmem:[#allocation2 + $0x38] sm:$0xff] }
 0x21b   :  { %v167_v47 = vmul.f32 %v166_v46, %v163_v45  ;;  %v2345_v45 = vld [vmem:[#allocation2 + $0x30] sm:$0xff]  ;;  %v2349_v46 = vld [vmem:[#allocation2 + $0x28] sm:$0xff] }
 0x21d   :  { %1523 = vmatmul.mubr.f32.vlgmr.msra.gmra.mxu1 %v167_v47  ;;  %v2353_v47 = vld [vmem:[#allocation2 + $0x20] sm:$0xff] }
 0x21e   :  { %1592 = vmatprep.mubr.msk.f32.mxu1 %vm1959_vm0, %v1958_v0  ;;  %1561 = vmatpush3.msra.mxu1 %v2311_v34 }
 0x21f   :  { %1562 = vmatprep.subr.mxu1 %v1958_v0 }
 0x220   :  { %1563 = vmatpush3.msra.mxu1 %v2313_v37 }
 0x221   :  { %1564 = vmatprep.subr.mxu1 %v1958_v0 }
 0x222   :  { %1565 = vmatpush3.msra.mxu1 %v2317_v38 }
 0x223   :  { %1566 = vmatprep.subr.mxu1 %v1958_v0 }
 0x224   :  { %1567 = vmatpush3.msra.mxu1 %v2321_v39 }
 0x225   :  { %1568 = vmatprep.subr.mxu1 %v1958_v0 }
 0x226   :  { %1569 = vmatpush3.msra.mxu1 %v2325_v40 }
 0x227   :  { %1570 = vmatprep.subr.mxu1 %v1958_v0 }
 0x228   :  { %1571 = vmatpush3.msra.mxu1 %v2329_v41 }
 0x229   :  { %1572 = vmatprep.subr.mxu1 %v1958_v0 }
 0x22a   :  { %1573 = vmatpush3.msra.mxu1 %v2333_v42 }
 0x22b   :  { %1574 = vmatprep.subr.mxu1 %v1958_v0 }
 0x22c   :  { %1575 = vmatpush3.msra.mxu1 %v2337_v43 }
 0x22d   :  { %1576 = vmatprep.subr.mxu1 %v1958_v0 }
 0x22e   :  { %1577 = vmatpush3.msra.mxu1 %v2341_v44 }
 0x22f   :  { %1578 = vmatprep.subr.mxu1 %v1958_v0 }
 0x230   :  { %1579 = vmatpush3.msra.mxu1 %v2345_v45 }
 0x231   :  { %1580 = vmatprep.subr.mxu1 %v1958_v0 }
 0x232   :  { %1581 = vmatpush3.msra.mxu1 %v2349_v46 }
 0x233   :  { %1582 = vmatprep.subr.mxu1 %v1958_v0 }
 0x234   :  { %1583 = vmatpush3.msra.mxu1 %v2353_v47 }
 0x235   :  { %1584 = vmatprep.subr.mxu1 %v1958_v0 }
 0x236   :  { %1585 = vmatpush3.msra.mxu1 %v2357_v48 }
 0x237   :  { %1586 = vmatprep.subr.mxu1 %v1958_v0 }
 0x2dd   :  { %v255_v50 = vpop.f32.mrf.mxu1 }
 0x2de   :  { %v256_v51 = vadd.f32 %v255_v50, %v188_v49  ;;  %v2361_v49 = vld [vmem:[#allocation2 + $0x10] sm:$0xff]  ;;  %v2365_v50 = vld [vmem:[#allocation2 + $0x8] sm:$0xff] }
 0x2df   :  { %v1524_v52 = vpop.f32.mrf.mxu1  ;;  %1587 = vmatpush3.msra.mxu1 %v2361_v49 }
 0x2e0   :  { %259 = vadd.xlane.f32.xlu1 %v256_v51  ;;  %1588 = vmatprep.subr.mxu1 %v1958_v0 }
 0x2e1   :  { %1589 = vmatpush3.msra.mxu1 %v2365_v50 }
 0x2e2   :  { %1590 = vmatprep.subr.mxu1 %v1958_v0 }
 0x369   :  { %v260_v53 = vpop.xlane.xlu1 %259 }
 0x36a   :  { %v261_v54 = vmul.f32 0.0078125, %v260_v53 }
 0x36c   :  { %v262_v55 = vsub.f32 %v256_v51, %v261_v54  ;;  %v2369_v51 = vld [vmem:[#allocation2] sm:$0xff] }
 0x36d   :  { %1591 = vmatpush3.msra.mxu1 %v2369_v51 }
 0x36e   :  { %v263_v56 = vmul.f32 %v262_v55, %v262_v55  ;;  %1630 = vmatprep.subr.mxu1 %v1958_v0 }
 0x370   :  { %264 = vadd.xlane.f32.xlu1 %v263_v56 }
 0x3f9   :  { %v265_v11 = vpop.xlane.xlu1 %264 }
 0x3fa   :  { %v266_v12 = vmul.f32 0.0078125, %v265_v11  ;;  %v2381_v11 = vrot.slane %v2304_v25, %v2133_v36 }
 0x3fc   :  { %v267_v13 = vadd.f32 1e-05, %v266_v12 }
 0x3fe   :  { %1869 = vrsqrt.f32 %v267_v13 }
 0x40b   :  { %v1870_v15 = vpop.eup %1869 }
 0x40c   :  { %v269_v17 = vmul.f32 %v1870_v15, %v262_v55  ;;  %v2377_v55 = vrot.slane %v2304_v25, %v2130_v35 }
 0x40e   :  { %v274_v18 = vmul.f32 %v273_v14, %v269_v17 }
 0x410   :  { %v279_v19 = vadd.f32 %v278_v16, %v274_v18 }
 0x412   :  { %v281_v20 = vmul.f32 0.70710677, %v279_v19  ;;  %v280_v22 = vmul.f32 0.5, %v279_v19 }
 0x414   :  { %1871 = verf.f32 %v281_v20  ;;  %v402_v20 = vld [vmem:[%s2728_s8] sm:$0x7] }
 0x421   :  { %v1872_v21 = vpop.eup %1871 }
 0x422   :  { %v283_v23 = vadd.f32 1.0, %v1872_v21  ;;  %v2423_v21 = vrot.slane %v402_v20, %v2056_v6 }
 0x424   :  { %v2264_v24 = vmul.f32 %v283_v23, %v280_v22 }
 0x426   :  { %1558 = vmatmul.mubr.f32.vlgmr.msra.gmra.mxu0 %v2264_v24 }
 0x427   :  { %1596 = vmatpush3.msra.mxu0 %v2151_v57  ;;  %1627 = vmatprep.mubr.msk.f32.mxu0 %vm1959_vm0, %v1958_v0 }
 0x428   :  { %1597 = vmatprep.subr.mxu0 %v1958_v0 }
 0x429   :  { %1598 = vmatpush3.msra.mxu0 %v2156_v58 }
 0x42a   :  { %1599 = vmatprep.subr.mxu0 %v1958_v0 }
 0x42b   :  { %1600 = vmatpush3.msra.mxu0 %v2163_v59 }
 0x42c   :  { %1601 = vmatprep.subr.mxu0 %v1958_v0 }
 0x42d   :  { %1602 = vmatpush3.msra.mxu0 %v2170_v60 }
 0x42e   :  { %1603 = vmatprep.subr.mxu0 %v1958_v0 }
 0x42f   :  { %1604 = vmatpush3.msra.mxu0 %v2177_v61 }
 0x430   :  { %1605 = vmatprep.subr.mxu0 %v1958_v0 }
 0x431   :  { %1606 = vmatpush3.msra.mxu0 %v2184_v62 }
 0x432   :  { %1607 = vmatprep.subr.mxu0 %v1958_v0 }
 0x433   :  { %1608 = vmatpush3.msra.mxu0 %v2191_v63 }
 0x434   :  { %1609 = vmatprep.subr.mxu0 %v1958_v0 }
 0x435   :  { %1610 = vmatpush3.msra.mxu0 %v2198_v1 }
 0x436   :  { %1611 = vmatprep.subr.mxu0 %v1958_v0 }
 0x437   :  { %1612 = vmatpush3.msra.mxu0 %v2205_v2 }
 0x438   :  { %1613 = vmatprep.subr.mxu0 %v1958_v0 }
 0x439   :  { %1614 = vmatpush3.msra.mxu0 %v2212_v3 }
 0x43a   :  { %1615 = vmatprep.subr.mxu0 %v1958_v0 }
 0x43b   :  { %1616 = vmatpush3.msra.mxu0 %v2219_v4 }
 0x43c   :  { %1617 = vmatprep.subr.mxu0 %v1958_v0 }
 0x43d   :  { %1618 = vmatpush3.msra.mxu0 %v2226_v5 }
 0x43e   :  { %1619 = vmatprep.subr.mxu0 %v1958_v0 }
 0x43f   :  { %1620 = vmatpush3.msra.mxu0 %v2233_v7 }
 0x440   :  { %1621 = vmatprep.subr.mxu0 %v1958_v0 }
 0x441   :  { %1622 = vmatpush3.msra.mxu0 %v2240_v8 }
 0x442   :  { %1623 = vmatprep.subr.mxu0 %v1958_v0 }
 0x443   :  { %1624 = vmatpush3.msra.mxu0 %v2247_v9 }
 0x444   :  { %1625 = vmatprep.subr.mxu0 %v1958_v0 }
 0x445   :  { %1626 = vmatpush3.msra.mxu0 %v2254_v10 }
 0x446   :  { %1665 = vmatprep.subr.mxu0 %v1958_v0 }
 0x4e6   :  { %v372_v27 = vpop.f32.mrf.mxu0 }
 0x4e7   :  { %v373_v28 = vadd.f32 %v372_v27, %v2308_v26 }
 0x4e8   :  { %v1559_v29 = vpop.f32.mrf.mxu0 }
 0x4e9   :  { %376 = vadd.xlane.f32.xlu0 %v373_v28 }
 0x572   :  { %v377_v30 = vpop.xlane.xlu0 %376 }
 0x573   :  { %v378_v31 = vmul.f32 0.0078125, %v377_v30 }
 0x575   :  { %v379_v32 = vsub.f32 %v373_v28, %v378_v31 }
 0x577   :  { %v380_v33 = vmul.f32 %v379_v32, %v379_v32 }
 0x579   :  { %381 = vadd.xlane.f32.xlu1 %v380_v33 }
 0x602   :  { %v382_v52 = vpop.xlane.xlu1 %381 }
 0x603   :  { %v383_v53 = vmul.f32 0.0078125, %v382_v52  ;;  %v2427_v52 = vrot.slane %v402_v20, %v2130_v35 }
 0x605   :  { %v384_v54 = vadd.f32 1e-05, %v383_v53 }
 0x607   :  { %1873 = vrsqrt.f32 %v384_v54  ;;  %v2430_v54 = vrot.slane %v402_v20, %v2133_v36 }
 0x614   :  { %v1874_v56 = vpop.eup %1873 }
 0x615   :  { %v386_v12 = vmul.f32 %v1874_v56, %v379_v32 }
 0x617   :  { %v391_v13 = vmul.f32 %v2377_v55, %v386_v12 }
 0x619   :  { %v396_v14 = vadd.f32 %v2381_v11, %v391_v13 }
 0x61b   :  { %v398_v15 = vmul.f32 0.70710677, %v396_v14  ;;  %v397_v17 = vmul.f32 0.5, %v396_v14 }
 0x61d   :  { %1875 = verf.f32 %v398_v15 }
 0x62a   :  { %v1876_v16 = vpop.eup %1875 }
 0x62b   :  { %v400_v18 = vadd.f32 1.0, %v1876_v16 }
 0x62d   :  { %v401_v19 = vmul.f32 %v400_v18, %v397_v17 }
 0x62f   :  { %1593 = vmatmul.mubr.f32.vlgmr.msra.gmra.mxu1 %v401_v19 }
 0x630   :  { %1631 = vmatpush3.msra.mxu1 %v2311_v34  ;;  %1662 = vmatprep.mubr.msk.f32.mxu1 %vm1959_vm0, %v1958_v0 }
 0x631   :  { %1632 = vmatprep.subr.mxu1 %v1958_v0 }
 0x632   :  { %1633 = vmatpush3.msra.mxu1 %v2313_v37 }
 0x633   :  { %1634 = vmatprep.subr.mxu1 %v1958_v0 }
 0x634   :  { %1635 = vmatpush3.msra.mxu1 %v2317_v38 }
 0x635   :  { %1636 = vmatprep.subr.mxu1 %v1958_v0 }
 0x636   :  { %1637 = vmatpush3.msra.mxu1 %v2321_v39 }
 0x637   :  { %1638 = vmatprep.subr.mxu1 %v1958_v0 }
 0x638   :  { %1639 = vmatpush3.msra.mxu1 %v2325_v40 }
 0x639   :  { %1640 = vmatprep.subr.mxu1 %v1958_v0 }
 0x63a   :  { %1641 = vmatpush3.msra.mxu1 %v2329_v41 }
 0x63b   :  { %1642 = vmatprep.subr.mxu1 %v1958_v0 }
 0x63c   :  { %1643 = vmatpush3.msra.mxu1 %v2333_v42 }
 0x63d   :  { %1644 = vmatprep.subr.mxu1 %v1958_v0 }
 0x63e   :  { %1645 = vmatpush3.msra.mxu1 %v2337_v43 }
 0x63f   :  { %1646 = vmatprep.subr.mxu1 %v1958_v0 }
 0x640   :  { %1647 = vmatpush3.msra.mxu1 %v2341_v44 }
 0x641   :  { %1648 = vmatprep.subr.mxu1 %v1958_v0 }
 0x642   :  { %1649 = vmatpush3.msra.mxu1 %v2345_v45 }
 0x643   :  { %1650 = vmatprep.subr.mxu1 %v1958_v0 }
 0x644   :  { %1651 = vmatpush3.msra.mxu1 %v2349_v46 }
 0x645   :  { %1652 = vmatprep.subr.mxu1 %v1958_v0 }
 0x646   :  { %1653 = vmatpush3.msra.mxu1 %v2353_v47 }
 0x647   :  { %1654 = vmatprep.subr.mxu1 %v1958_v0 }
 0x648   :  { %1655 = vmatpush3.msra.mxu1 %v2357_v48 }
 0x649   :  { %1656 = vmatprep.subr.mxu1 %v1958_v0 }
 0x64a   :  { %1657 = vmatpush3.msra.mxu1 %v2361_v49 }
 0x64b   :  { %1658 = vmatprep.subr.mxu1 %v1958_v0 }
 0x64c   :  { %1659 = vmatpush3.msra.mxu1 %v2365_v50 }
 0x64d   :  { %1660 = vmatprep.subr.mxu1 %v1958_v0 }
 0x64e   :  { %1661 = vmatpush3.msra.mxu1 %v2369_v51 }
 0x64f   :  { %1700 = vmatprep.subr.mxu1 %v1958_v0 }
 0x6ef   :  { %v489_v22 = vpop.f32.mrf.mxu1 }
 0x6f0   :  { %v490_v23 = vadd.f32 %v489_v22, %v2423_v21 }
 0x6f1   :  { %v1594_v25 = vpop.f32.mrf.mxu1 }
 0x6f2   :  { %493 = vadd.xlane.f32.xlu0 %v490_v23 }
 0x77b   :  { %v494_v27 = vpop.xlane.xlu0 %493 }
 0x77c   :  { %v495_v28 = vmul.f32 0.0078125, %v494_v27 }
 0x77e   :  { %v496_v29 = vsub.f32 %v490_v23, %v495_v28 }
 0x780   :  { %v497_v30 = vmul.f32 %v496_v29, %v496_v29 }
 0x782   :  { %498 = vadd.xlane.f32.xlu1 %v497_v30 }
 0x80b   :  { %v499_v31 = vpop.xlane.xlu1 %498 }
 0x80c   :  { %v500_v32 = vmul.f32 0.0078125, %v499_v31 }
 0x80e   :  { %v501_v33 = vadd.f32 1e-05, %v500_v32 }
 0x810   :  { %1877 = vrsqrt.f32 %v501_v33 }
 0x81d   :  { %v1878_v53 = vpop.eup %1877 }
 0x81e   :  { %v503_v56 = vmul.f32 %v1878_v53, %v496_v29 }
 0x820   :  { %v508_v12 = vmul.f32 %v2427_v52, %v503_v56 }
 0x822   :  { %v513_v13 = vadd.f32 %v2430_v54, %v508_v12 }
 0x824   :  { %v515_v14 = vmul.f32 0.70710677, %v513_v13  ;;  %v514_v16 = vmul.f32 0.5, %v513_v13 }
 0x826   :  { %1879 = verf.f32 %v515_v14 }
 0x833   :  { %v1880_v15 = vpop.eup %1879 }
 0x834   :  { %v517_v17 = vadd.f32 1.0, %v1880_v15 }
 0x836   :  { %v518_v18 = vmul.f32 %v517_v17, %v514_v16 }
 0x838   :  { %v2435_v19 = vadd.f32 %v518_v18, %v2264_v24 }
 0x83a   :  { %1628 = vmatmul.mubr.f32.vlgmr.msra.gmra.mxu0 %v2435_v19 }
 0x83b   :  { %1666 = vmatpush3.msra.mxu0 %v2151_v57  ;;  %1697 = vmatprep.mubr.msk.f32.mxu0 %vm1959_vm0, %v1958_v0 }
 0x83c   :  { %1667 = vmatprep.subr.mxu0 %v1958_v0 }
 0x83d   :  { %1668 = vmatpush3.msra.mxu0 %v2156_v58 }
 0x83e   :  { %1669 = vmatprep.subr.mxu0 %v1958_v0 }
 0x83f   :  { %1670 = vmatpush3.msra.mxu0 %v2163_v59 }
 0x840   :  { %1671 = vmatprep.subr.mxu0 %v1958_v0 }
 0x841   :  { %1672 = vmatpush3.msra.mxu0 %v2170_v60 }
 0x842   :  { %1673 = vmatprep.subr.mxu0 %v1958_v0 }
 0x843   :  { %1674 = vmatpush3.msra.mxu0 %v2177_v61 }
 0x844   :  { %1675 = vmatprep.subr.mxu0 %v1958_v0 }
 0x845   :  { %1676 = vmatpush3.msra.mxu0 %v2184_v62 }
 0x846   :  { %1677 = vmatprep.subr.mxu0 %v1958_v0 }
 0x847   :  { %1678 = vmatpush3.msra.mxu0 %v2191_v63 }
 0x848   :  { %1679 = vmatprep.subr.mxu0 %v1958_v0 }
 0x849   :  { %1680 = vmatpush3.msra.mxu0 %v2198_v1 }
 0x84a   :  { %1681 = vmatprep.subr.mxu0 %v1958_v0 }
 0x84b   :  { %1682 = vmatpush3.msra.mxu0 %v2205_v2 }
 0x84c   :  { %1683 = vmatprep.subr.mxu0 %v1958_v0 }
 0x84d   :  { %1684 = vmatpush3.msra.mxu0 %v2212_v3 }
 0x84e   :  { %1685 = vmatprep.subr.mxu0 %v1958_v0 }
 0x84f   :  { %1686 = vmatpush3.msra.mxu0 %v2219_v4 }
 0x850   :  { %1687 = vmatprep.subr.mxu0 %v1958_v0 }
 0x851   :  { %1688 = vmatpush3.msra.mxu0 %v2226_v5 }
 0x852   :  { %1689 = vmatprep.subr.mxu0 %v1958_v0 }
 0x853   :  { %1690 = vmatpush3.msra.mxu0 %v2233_v7 }
 0x854   :  { %1691 = vmatprep.subr.mxu0 %v1958_v0 }
 0x855   :  { %1692 = vmatpush3.msra.mxu0 %v2240_v8 }
 0x856   :  { %1693 = vmatprep.subr.mxu0 %v1958_v0 }
 0x857   :  { %1694 = vmatpush3.msra.mxu0 %v2247_v9 }
 0x858   :  { %1695 = vmatprep.subr.mxu0 %v1958_v0 }
 0x859   :  { %1696 = vmatpush3.msra.mxu0 %v2254_v10 }
 0x85a   :  { %1735 = vmatprep.subr.mxu0 %v1958_v0 }
 0x8fa   :  { %v586_v24 = vpop.f32.mrf.mxu0 }
 0x8fb   :  { %v587_v20 = vadd.f32 %v586_v24, %v2308_v26 }
 0x8fc   :  { %v1629_v22 = vpop.f32.mrf.mxu0 }
 0x8fd   :  { %590 = vadd.xlane.f32.xlu0 %v587_v20 }
 0x986   :  { %v591_v23 = vpop.xlane.xlu0 %590 }
 0x987   :  { %v592_v25 = vmul.f32 0.0078125, %v591_v23 }
 0x989   :  { %v593_v27 = vsub.f32 %v587_v20, %v592_v25 }
 0x98b   :  { %v594_v28 = vmul.f32 %v593_v27, %v593_v27 }
 0x98d   :  { %595 = vadd.xlane.f32.xlu1 %v594_v28 }
 0xa16   :  { %v596_v29 = vpop.xlane.xlu1 %595 }
 0xa17   :  { %v597_v30 = vmul.f32 0.0078125, %v596_v29 }
 0xa19   :  { %v598_v31 = vadd.f32 1e-05, %v597_v30 }
 0xa1b   :  { %1881 = vrsqrt.f32 %v598_v31 }
 0xa28   :  { %v1882_v32 = vpop.eup %1881 }
 0xa29   :  { %v600_v33 = vmul.f32 %v1882_v32, %v593_v27 }
 0xa2b   :  { %v601_v53 = vmul.f32 %v600_v33, %v2377_v55 }
 0xa2d   :  { %v602_v56 = vadd.f32 %v601_v53, %v2381_v11 }
 0xa2f   :  { %v604_v12 = vmul.f32 0.70710677, %v602_v56  ;;  %v603_v14 = vmul.f32 0.5, %v602_v56 }
 0xa31   :  { %1883 = verf.f32 %v604_v12 }
 0xa3e   :  { %v1884_v13 = vpop.eup %1883 }
 0xa3f   :  { %v606_v15 = vadd.f32 1.0, %v1884_v13 }
 0xa41   :  { %v607_v16 = vmul.f32 %v606_v15, %v603_v14 }
 0xa43   :  { %1663 = vmatmul.mubr.f32.vlgmr.msra.gmra.mxu1 %v607_v16 }
 0xa44   :  { %1701 = vmatpush3.msra.mxu1 %v2311_v34  ;;  %1732 = vmatprep.mubr.msk.f32.mxu1 %vm1959_vm0, %v1958_v0 }
 0xa45   :  { %1702 = vmatprep.subr.mxu1 %v1958_v0 }
 0xa46   :  { %1703 = vmatpush3.msra.mxu1 %v2313_v37 }
 0xa47   :  { %1704 = vmatprep.subr.mxu1 %v1958_v0 }
 0xa48   :  { %1705 = vmatpush3.msra.mxu1 %v2317_v38 }
 0xa49   :  { %1706 = vmatprep.subr.mxu1 %v1958_v0 }
 0xa4a   :  { %1707 = vmatpush3.msra.mxu1 %v2321_v39 }
 0xa4b   :  { %1708 = vmatprep.subr.mxu1 %v1958_v0 }
 0xa4c   :  { %1709 = vmatpush3.msra.mxu1 %v2325_v40 }
 0xa4d   :  { %1710 = vmatprep.subr.mxu1 %v1958_v0 }
 0xa4e   :  { %1711 = vmatpush3.msra.mxu1 %v2329_v41 }
 0xa4f   :  { %1712 = vmatprep.subr.mxu1 %v1958_v0 }
 0xa50   :  { %1713 = vmatpush3.msra.mxu1 %v2333_v42 }
 0xa51   :  { %1714 = vmatprep.subr.mxu1 %v1958_v0 }
 0xa52   :  { %1715 = vmatpush3.msra.mxu1 %v2337_v43 }
 0xa53   :  { %1716 = vmatprep.subr.mxu1 %v1958_v0 }
 0xa54   :  { %1717 = vmatpush3.msra.mxu1 %v2341_v44 }
 0xa55   :  { %1718 = vmatprep.subr.mxu1 %v1958_v0 }
 0xa56   :  { %1719 = vmatpush3.msra.mxu1 %v2345_v45 }
 0xa57   :  { %1720 = vmatprep.subr.mxu1 %v1958_v0 }
 0xa58   :  { %1721 = vmatpush3.msra.mxu1 %v2349_v46 }
 0xa59   :  { %1722 = vmatprep.subr.mxu1 %v1958_v0 }
 0xa5a   :  { %1723 = vmatpush3.msra.mxu1 %v2353_v47 }
 0xa5b   :  { %1724 = vmatprep.subr.mxu1 %v1958_v0 }
 0xa5c   :  { %1725 = vmatpush3.msra.mxu1 %v2357_v48 }
 0xa5d   :  { %1726 = vmatprep.subr.mxu1 %v1958_v0 }
 0xa5e   :  { %1727 = vmatpush3.msra.mxu1 %v2361_v49 }
 0xa5f   :  { %1728 = vmatprep.subr.mxu1 %v1958_v0 }
 0xa60   :  { %1729 = vmatpush3.msra.mxu1 %v2365_v50 }
 0xa61   :  { %1730 = vmatprep.subr.mxu1 %v1958_v0 }
 0xa62   :  { %1731 = vmatpush3.msra.mxu1 %v2369_v51 }
 0xa63   :  { %1770 = vmatprep.subr.mxu1 %v1958_v0 }
 0xb03   :  { %v674_v17 = vpop.f32.mrf.mxu1 }
 0xb04   :  { %v675_v18 = vadd.f32 %v674_v17, %v2423_v21 }
 0xb05   :  { %v1664_v24 = vpop.f32.mrf.mxu1 }
 0xb06   :  { %678 = vadd.xlane.f32.xlu0 %v675_v18 }
 0xb8f   :  { %v679_v20 = vpop.xlane.xlu0 %678 }
 0xb90   :  { %v680_v22 = vmul.f32 0.0078125, %v679_v20 }
 0xb92   :  { %v681_v23 = vsub.f32 %v675_v18, %v680_v22 }
 0xb94   :  { %v682_v25 = vmul.f32 %v681_v23, %v681_v23 }
 0xb96   :  { %683 = vadd.xlane.f32.xlu1 %v682_v25 }
 0xc1f   :  { %v684_v27 = vpop.xlane.xlu1 %683 }
 0xc20   :  { %v685_v28 = vmul.f32 0.0078125, %v684_v27 }
 0xc22   :  { %v686_v29 = vadd.f32 1e-05, %v685_v28 }
 0xc24   :  { %1885 = vrsqrt.f32 %v686_v29 }
 0xc31   :  { %v1886_v30 = vpop.eup %1885 }
 0xc32   :  { %v688_v31 = vmul.f32 %v1886_v30, %v681_v23 }
 0xc34   :  { %v689_v32 = vmul.f32 %v688_v31, %v2427_v52 }
 0xc36   :  { %v690_v33 = vadd.f32 %v689_v32, %v2430_v54 }
 0xc38   :  { %v692_v53 = vmul.f32 0.70710677, %v690_v33  ;;  %v691_v12 = vmul.f32 0.5, %v690_v33 }
 0xc3a   :  { %1887 = verf.f32 %v692_v53 }
 0xc47   :  { %v1888_v56 = vpop.eup %1887 }
 0xc48   :  { %v694_v13 = vadd.f32 1.0, %v1888_v56 }
 0xc4a   :  { %v695_v14 = vmul.f32 %v694_v13, %v691_v12 }
 0xc4c   :  { %v2513_v15 = vadd.f32 %v695_v14, %v2435_v19 }
 0xc4e   :  { %1698 = vmatmul.mubr.f32.vlgmr.msra.gmra.mxu0 %v2513_v15 }
 0xc4f   :  { %1736 = vmatpush3.msra.mxu0 %v2151_v57  ;;  %1767 = vmatprep.mubr.msk.f32.mxu0 %vm1959_vm0, %v1958_v0 }
 0xc50   :  { %1737 = vmatprep.subr.mxu0 %v1958_v0 }
 0xc51   :  { %1738 = vmatpush3.msra.mxu0 %v2156_v58 }
 0xc52   :  { %1739 = vmatprep.subr.mxu0 %v1958_v0 }
 0xc53   :  { %1740 = vmatpush3.msra.mxu0 %v2163_v59 }
 0xc54   :  { %1741 = vmatprep.subr.mxu0 %v1958_v0 }
 0xc55   :  { %1742 = vmatpush3.msra.mxu0 %v2170_v60 }
 0xc56   :  { %1743 = vmatprep.subr.mxu0 %v1958_v0 }
 0xc57   :  { %1744 = vmatpush3.msra.mxu0 %v2177_v61 }
 0xc58   :  { %1745 = vmatprep.subr.mxu0 %v1958_v0 }
 0xc59   :  { %1746 = vmatpush3.msra.mxu0 %v2184_v62 }
 0xc5a   :  { %1747 = vmatprep.subr.mxu0 %v1958_v0 }
 0xc5b   :  { %1748 = vmatpush3.msra.mxu0 %v2191_v63 }
 0xc5c   :  { %1749 = vmatprep.subr.mxu0 %v1958_v0 }
 0xc5d   :  { %1750 = vmatpush3.msra.mxu0 %v2198_v1 }
 0xc5e   :  { %1751 = vmatprep.subr.mxu0 %v1958_v0 }
 0xc5f   :  { %1752 = vmatpush3.msra.mxu0 %v2205_v2 }
 0xc60   :  { %1753 = vmatprep.subr.mxu0 %v1958_v0 }
 0xc61   :  { %1754 = vmatpush3.msra.mxu0 %v2212_v3 }
 0xc62   :  { %1755 = vmatprep.subr.mxu0 %v1958_v0 }
 0xc63   :  { %1756 = vmatpush3.msra.mxu0 %v2219_v4 }
 0xc64   :  { %1757 = vmatprep.subr.mxu0 %v1958_v0 }
 0xc65   :  { %1758 = vmatpush3.msra.mxu0 %v2226_v5 }
 0xc66   :  { %1759 = vmatprep.subr.mxu0 %v1958_v0 }
 0xc67   :  { %1760 = vmatpush3.msra.mxu0 %v2233_v7 }
 0xc68   :  { %1761 = vmatprep.subr.mxu0 %v1958_v0 }
 0xc69   :  { %1762 = vmatpush3.msra.mxu0 %v2240_v8 }
 0xc6a   :  { %1763 = vmatprep.subr.mxu0 %v1958_v0 }
 0xc6b   :  { %1764 = vmatpush3.msra.mxu0 %v2247_v9 }
 0xc6c   :  { %1765 = vmatprep.subr.mxu0 %v1958_v0 }
 0xc6d   :  { %1766 = vmatpush3.msra.mxu0 %v2254_v10 }
 0xc6e   :  { %1805 = vmatprep.subr.mxu0 %v1958_v0 }
 0xd0e   :  { %v763_v57 = vpop.f32.mrf.mxu0 }
 0xd0f   :  { %v764_v58 = vadd.f32 %v763_v57, %v2308_v26 }
 0xd10   :  { %v1699_v59 = vpop.f32.mrf.mxu0 }
 0xd11   :  { %767 = vadd.xlane.f32.xlu0 %v764_v58 }
 0xd9a   :  { %v768_v60 = vpop.xlane.xlu0 %767 }
 0xd9b   :  { %v769_v61 = vmul.f32 0.0078125, %v768_v60 }
 0xd9d   :  { %v770_v62 = vsub.f32 %v764_v58, %v769_v61 }
 0xd9f   :  { %v771_v63 = vmul.f32 %v770_v62, %v770_v62 }
 0xda1   :  { %772 = vadd.xlane.f32.xlu1 %v771_v63 }
 0xe2a   :  { %v773_v1 = vpop.xlane.xlu1 %772 }
 0xe2b   :  { %v774_v2 = vmul.f32 0.0078125, %v773_v1 }
 0xe2d   :  { %v775_v3 = vadd.f32 1e-05, %v774_v2 }
 0xe2f   :  { %1889 = vrsqrt.f32 %v775_v3  ;;  %v1066_v3 = vld [vmem:[%s2729_s9 + $0x70] sm:$0xff] }
 0xe3c   :  { %v1890_v4 = vpop.eup %1889 }
 0xe3d   :  { %v777_v5 = vmul.f32 %v1890_v4, %v770_v62  ;;  %v1064_v4 = vld [vmem:[%s2729_s9 + $0x60] sm:$0xff] }
 0xe3f   :  { %v778_v7 = vmul.f32 %v777_v5, %v2377_v55  ;;  %v1063_v5 = vld [vmem:[%s2729_s9 + $0x58] sm:$0xff] }
 0xe41   :  { %v779_v8 = vadd.f32 %v778_v7, %v2381_v11  ;;  %v1062_v7 = vld [vmem:[%s2729_s9 + $0x50] sm:$0xff] }
 0xe43   :  { %v781_v9 = vmul.f32 0.70710677, %v779_v8  ;;  %v780_v19 = vmul.f32 0.5, %v779_v8  ;;  %v1061_v8 = vld [vmem:[%s2729_s9 + $0x48] sm:$0xff] }
 0xe45   :  { %1891 = verf.f32 %v781_v9  ;;  %v1060_v9 = vld [vmem:[%s2729_s9 + $0x40] sm:$0xff] }
 0xe52   :  { %v1892_v10 = vpop.eup %1891 }
 0xe53   :  { %v783_v16 = vadd.f32 1.0, %v1892_v10  ;;  %v1059_v10 = vld [vmem:[%s2729_s9 + $0x38] sm:$0xff] }
 0xe55   :  { %v784_v17 = vmul.f32 %v783_v16, %v780_v19  ;;  %v1058_v19 = vld [vmem:[%s2729_s9 + $0x30] sm:$0xff]  ;;  %v1057_v16 = vld [vmem:[%s2729_s9 + $0x28] sm:$0xff] }
 0xe57   :  { %1733 = vmatmul.mubr.f32.vlgmr.msra.gmra.mxu1 %v784_v17  ;;  %v1056_v17 = vld [vmem:[%s2729_s9 + $0x20] sm:$0xff] }
 0xe58   :  { %1771 = vmatpush3.msra.mxu1 %v2311_v34  ;;  %1802 = vmatprep.mubr.msk.f32.mxu1 %vm1959_vm0, %v1958_v0 }
 0xe59   :  { %1772 = vmatprep.subr.mxu1 %v1958_v0 }
 0xe5a   :  { %1773 = vmatpush3.msra.mxu1 %v2313_v37 }
 0xe5b   :  { %1774 = vmatprep.subr.mxu1 %v1958_v0 }
 0xe5c   :  { %1775 = vmatpush3.msra.mxu1 %v2317_v38 }
 0xe5d   :  { %1776 = vmatprep.subr.mxu1 %v1958_v0 }
 0xe5e   :  { %1777 = vmatpush3.msra.mxu1 %v2321_v39 }
 0xe5f   :  { %1778 = vmatprep.subr.mxu1 %v1958_v0 }
 0xe60   :  { %1779 = vmatpush3.msra.mxu1 %v2325_v40 }
 0xe61   :  { %1780 = vmatprep.subr.mxu1 %v1958_v0 }
 0xe62   :  { %1781 = vmatpush3.msra.mxu1 %v2329_v41 }
 0xe63   :  { %1782 = vmatprep.subr.mxu1 %v1958_v0 }
 0xe64   :  { %1783 = vmatpush3.msra.mxu1 %v2333_v42 }
 0xe65   :  { %1784 = vmatprep.subr.mxu1 %v1958_v0 }
 0xe66   :  { %1785 = vmatpush3.msra.mxu1 %v2337_v43 }
 0xe67   :  { %1786 = vmatprep.subr.mxu1 %v1958_v0 }
 0xe68   :  { %1787 = vmatpush3.msra.mxu1 %v2341_v44 }
 0xe69   :  { %1788 = vmatprep.subr.mxu1 %v1958_v0 }
 0xe6a   :  { %1789 = vmatpush3.msra.mxu1 %v2345_v45 }
 0xe6b   :  { %1790 = vmatprep.subr.mxu1 %v1958_v0 }
 0xe6c   :  { %1791 = vmatpush3.msra.mxu1 %v2349_v46 }
 0xe6d   :  { %1792 = vmatprep.subr.mxu1 %v1958_v0 }
 0xe6e   :  { %1793 = vmatpush3.msra.mxu1 %v2353_v47 }
 0xe6f   :  { %1794 = vmatprep.subr.mxu1 %v1958_v0 }
 0xe70   :  { %1795 = vmatpush3.msra.mxu1 %v2357_v48 }
 0xe71   :  { %1796 = vmatprep.subr.mxu1 %v1958_v0 }
 0xe72   :  { %1797 = vmatpush3.msra.mxu1 %v2361_v49 }
 0xe73   :  { %1798 = vmatprep.subr.mxu1 %v1958_v0 }
 0xe74   :  { %1799 = vmatpush3.msra.mxu1 %v2365_v50 }
 0xe75   :  { %1800 = vmatprep.subr.mxu1 %v1958_v0 }
 0xe76   :  { %1801 = vmatpush3.msra.mxu1 %v2369_v51 }
 0xe77   :  { %1840 = vmatprep.subr.mxu1 %v1958_v0 }
 0xf17   :  { %v851_v34 = vpop.f32.mrf.mxu1 }
 0xf18   :  { %v852_v37 = vadd.f32 %v851_v34, %v2423_v21  ;;  %v1055_v34 = vld [vmem:[%s2729_s9 + $0x18] sm:$0xff] }
 0xf19   :  { %v1734_v38 = vpop.f32.mrf.mxu1 }
 0xf1a   :  { %855 = vadd.xlane.f32.xlu0 %v852_v37  ;;  %v1053_v38 = vld [vmem:[%s2729_s9 + $0x8] sm:$0xff] }
 0xfa3   :  { %v856_v39 = vpop.xlane.xlu0 %855 }
 0xfa4   :  { %v857_v40 = vmul.f32 0.0078125, %v856_v39  ;;  %v1052_v39 = vld [vmem:[%s2729_s9] sm:$0xff] }
 0xfa6   :  { %v858_v41 = vsub.f32 %v852_v37, %v857_v40  ;;  %v1054_v37 = vld [vmem:[%s2729_s9 + $0x10] sm:$0xff] }
 0xfa8   :  { %v859_v42 = vmul.f32 %v858_v41, %v858_v41 }
 0xfaa   :  { %860 = vadd.xlane.f32.xlu1 %v859_v42 }
0x1033   :  { %v861_v43 = vpop.xlane.xlu1 %860 }
0x1034   :  { %v862_v44 = vmul.f32 0.0078125, %v861_v43 }
0x1036   :  { %v863_v45 = vadd.f32 1e-05, %v862_v44 }
0x1038   :  { %1893 = vrsqrt.f32 %v863_v45 }
0x1045   :  { %v1894_v46 = vpop.eup %1893 }
0x1046   :  { %v865_v47 = vmul.f32 %v1894_v46, %v858_v41 }
0x1048   :  { %v866_v48 = vmul.f32 %v865_v47, %v2427_v52 }
0x104a   :  { %v867_v49 = vadd.f32 %v866_v48, %v2430_v54 }
0x104c   :  { %v869_v50 = vmul.f32 0.70710677, %v867_v49  ;;  %v868_v18 = vmul.f32 0.5, %v867_v49 }
0x104e   :  { %1895 = verf.f32 %v869_v50 }
0x105b   :  { %v1896_v51 = vpop.eup %1895 }
0x105c   :  { %v871_v24 = vadd.f32 1.0, %v1896_v51 }
0x105e   :  { %v872_v20 = vmul.f32 %v871_v24, %v868_v18  ;;  %v1051_v24 = vld [vmem:[%s2730_s10] sm:$0x7] }
0x1060   :  { %v2591_v22 = vadd.f32 %v872_v20, %v2513_v15  ;;  %v1071_v20 = vrot.slane %v1051_v24, %v2056_v6 }
0x1062   :  { %1768 = vmatmul.mubr.f32.vlgmr.msra.gmra.mxu0 %v2591_v22 }
0x1063   :  { %1837 = vmatprep.mubr.msk.f32.mxu0 %vm1959_vm0, %v1958_v0 }
0x1122   :  { %v940_v23 = vpop.f32.mrf.mxu0 }
0x1123   :  { %v941_v25 = vadd.f32 %v940_v23, %v2308_v26 }
0x1124   :  { %v1769_v27 = vpop.f32.mrf.mxu0 }
0x1125   :  { %944 = vadd.xlane.f32.xlu0 %v941_v25 }
0x11ae   :  { %v945_v28 = vpop.xlane.xlu0 %944 }
0x11af   :  { %v946_v29 = vmul.f32 0.0078125, %v945_v28 }
0x11b1   :  { %v947_v30 = vsub.f32 %v941_v25, %v946_v29 }
0x11b3   :  { %v948_v31 = vmul.f32 %v947_v30, %v947_v30 }
0x11b5   :  { %949 = vadd.xlane.f32.xlu1 %v948_v31  ;;  %v1180_v31 = vld [vmem:[%s2731_s11 + $0x38] sm:$0xff] }
0x123e   :  { %v950_v32 = vpop.xlane.xlu1 %949 }
0x123f   :  { %v951_v33 = vmul.f32 0.0078125, %v950_v32  ;;  %v1179_v32 = vld [vmem:[%s2731_s11 + $0x30] sm:$0xff] }
0x1241   :  { %v952_v53 = vadd.f32 1e-05, %v951_v33  ;;  %v1178_v33 = vld [vmem:[%s2731_s11 + $0x28] sm:$0xff] }
0x1243   :  { %1897 = vrsqrt.f32 %v952_v53  ;;  %v1177_v53 = vld [vmem:[%s2731_s11 + $0x20] sm:$0xff] }
0x1250   :  { %v1898_v56 = vpop.eup %1897 }
0x1251   :  { %v954_v12 = vmul.f32 %v1898_v56, %v947_v30  ;;  %v1176_v56 = vld [vmem:[%s2731_s11 + $0x18] sm:$0xff] }
0x1253   :  { %v955_v13 = vmul.f32 %v954_v12, %v2377_v55  ;;  %v1175_v12 = vld [vmem:[%s2731_s11 + $0x10] sm:$0xff] }
0x1255   :  { %v956_v14 = vadd.f32 %v955_v13, %v2381_v11  ;;  %v1067_v11 = vld [vmem:[%s2729_s9 + $0x78] sm:$0xff]  ;;  %v1174_v13 = vld [vmem:[%s2731_s11 + $0x8] sm:$0xff] }
0x1256   :  { %1806 = vmatpush3.msra.mxu0 %v1067_v11 }
0x1257   :  { %v958_v15 = vmul.f32 0.70710677, %v956_v14  ;;  %v957_v57 = vmul.f32 0.5, %v956_v14  ;;  %1807 = vmatprep.subr.mxu0 %v1958_v0  ;;  %v1173_v14 = vld [vmem:[%s2731_s11] sm:$0xff] }
0x1258   :  { %1808 = vmatpush3.msra.mxu0 %v1066_v3 }
0x1259   :  { %1899 = verf.f32 %v958_v15  ;;  %1809 = vmatprep.subr.mxu0 %v1958_v0 }
0x1266   :  { %v1900_v26 = vpop.eup %1899 }
0x1267   :  { %v960_v58 = vadd.f32 1.0, %v1900_v26 }
0x1269   :  { %v961_v59 = vmul.f32 %v960_v58, %v957_v57  ;;  %v1160_v58 = vrot.slane %v1051_v24, %v2130_v35 }
0x126b   :  { %1803 = vmatmul.mubr.f32.vlgmr.msra.gmra.mxu1 %v961_v59 }
0x126c   :  { %1856 = vmatprep.mubr.msk.f32.mxu1 %vm1959_vm0, %v1958_v0  ;;  %1841 = vmatpush3.msra.mxu1 %v1180_v31 }
0x126d   :  { %1842 = vmatprep.subr.mxu1 %v1958_v0 }
0x126e   :  { %1843 = vmatpush3.msra.mxu1 %v1179_v32 }
0x126f   :  { %1844 = vmatprep.subr.mxu1 %v1958_v0 }
0x1270   :  { %1845 = vmatpush3.msra.mxu1 %v1178_v33 }
0x1271   :  { %1846 = vmatprep.subr.mxu1 %v1958_v0 }
0x1272   :  { %1847 = vmatpush3.msra.mxu1 %v1177_v53 }
0x1273   :  { %1848 = vmatprep.subr.mxu1 %v1958_v0 }
0x1274   :  { %1849 = vmatpush3.msra.mxu1 %v1176_v56 }
0x1275   :  { %1850 = vmatprep.subr.mxu1 %v1958_v0 }
0x1276   :  { %1851 = vmatpush3.msra.mxu1 %v1175_v12 }
0x1277   :  { %1852 = vmatprep.subr.mxu1 %v1958_v0 }
0x1278   :  { %1853 = vmatpush3.msra.mxu1 %v1174_v13 }
0x1279   :  { %1854 = vmatprep.subr.mxu1 %v1958_v0 }
0x127a   :  { %1855 = vmatpush3.msra.mxu1 %v1173_v14 }
0x132b   :  { %v1028_v60 = vpop.f32.mrf.mxu1 }
0x132c   :  { %v1029_v61 = vadd.f32 %v1028_v60, %v2423_v21  ;;  %v1065_v21 = vld [vmem:[%s2729_s9 + $0x68] sm:$0xff]  ;;  %v1165_v60 = vrot.slane %v1051_v24, %v2133_v36 }
0x132d   :  { %v1804_v62 = vpop.f32.mrf.mxu1  ;;  %1810 = vmatpush3.msra.mxu0 %v1065_v21 }
0x132e   :  { %1032 = vadd.xlane.f32.xlu0 %v1029_v61  ;;  %1811 = vmatprep.subr.mxu0 %v1958_v0 }
0x132f   :  { %1812 = vmatpush3.msra.mxu0 %v1064_v4 }
0x1330   :  { %1813 = vmatprep.subr.mxu0 %v1958_v0 }
0x1331   :  { %1814 = vmatpush3.msra.mxu0 %v1063_v5 }
0x1332   :  { %1815 = vmatprep.subr.mxu0 %v1958_v0 }
0x1333   :  { %1816 = vmatpush3.msra.mxu0 %v1062_v7 }
0x1334   :  { %1817 = vmatprep.subr.mxu0 %v1958_v0 }
0x1335   :  { %1818 = vmatpush3.msra.mxu0 %v1061_v8 }
0x1336   :  { %1819 = vmatprep.subr.mxu0 %v1958_v0 }
0x1337   :  { %1820 = vmatpush3.msra.mxu0 %v1060_v9 }
0x1338   :  { %1821 = vmatprep.subr.mxu0 %v1958_v0 }
0x1339   :  { %1822 = vmatpush3.msra.mxu0 %v1059_v10 }
0x133a   :  { %1823 = vmatprep.subr.mxu0 %v1958_v0 }
0x133b   :  { %1824 = vmatpush3.msra.mxu0 %v1058_v19 }
0x133c   :  { %1825 = vmatprep.subr.mxu0 %v1958_v0 }
0x133d   :  { %1826 = vmatpush3.msra.mxu0 %v1057_v16 }
0x133e   :  { %1827 = vmatprep.subr.mxu0 %v1958_v0 }
0x133f   :  { %1828 = vmatpush3.msra.mxu0 %v1056_v17 }
0x1340   :  { %1829 = vmatprep.subr.mxu0 %v1958_v0 }
0x1341   :  { %1830 = vmatpush3.msra.mxu0 %v1055_v34 }
0x1342   :  { %1831 = vmatprep.subr.mxu0 %v1958_v0 }
0x1343   :  { %1832 = vmatpush3.msra.mxu0 %v1054_v37 }
0x1344   :  { %1833 = vmatprep.subr.mxu0 %v1958_v0 }
0x1345   :  { %1834 = vmatpush3.msra.mxu0 %v1053_v38 }
0x1346   :  { %1835 = vmatprep.subr.mxu0 %v1958_v0  ;;  %v1172_v0 = vld [vmem:[%s2732_s12] sm:$0x7]  ;;  %s1960_s12 = smov [#allocation5]  }
0x1347   :  { %1836 = vmatpush3.msra.mxu0 %v1052_v39  ;;  %v1184_v21 = vrot.slane %v1172_v0, %v2056_v6  ;;  %v1276_v6 = vrot.slane %v1172_v0, %v2130_v35  ;;  %s1290_s20 = sshll.u32 %s1960_s12, 4  ;;  %s1291_s20 = int_to_ptr.vmem [resolvable:$true] %s1290_s20 }
0x1348   :  { %s1931_s6 = scalar_lea.vmem %s1291_s20, 128  ;;  %p1936_p6 = scmp.lt.s32.totalorder %s1291_s20, %s1291_s20 }
0x1349   :  { %p1932_p5 = scmp.ne.s32.totalorder %s1291_s20, %s1931_s6  ;;  %p1937_p7 = scmp.lt.s32.totalorder %s1931_s6, %s1931_s6 }
0x134b   :  { %p1938_p8 = por %p1937_p7, %p1936_p6 }
0x134d   :  { %p1939_p9 = pnand %p1938_p8, %p1932_p5 }
0x13b7   :  { %v1033_v63 = vpop.xlane.xlu0 %1032 }
0x13b8   :  { %v1034_v1 = vmul.f32 0.0078125, %v1033_v63 }
0x13ba   :  { %v1035_v55 = vsub.f32 %v1029_v61, %v1034_v1 }
0x13bc   :  { %v1036_v2 = vmul.f32 %v1035_v55, %v1035_v55 }
0x13be   :  { %1037 = vadd.xlane.f32.xlu1 %v1036_v2 }
0x1447   :  { %v1038_v40 = vpop.xlane.xlu1 %1037 }
0x1448   :  { %v1039_v41 = vmul.f32 0.0078125, %v1038_v40  ;;  %v1281_v40 = vrot.slane %v1172_v0, %v2133_v36 }
0x144a   :  { %v1040_v42 = vadd.f32 1e-05, %v1039_v41 }
0x144c   :  { %1901 = vrsqrt.f32 %v1040_v42 }
0x1459   :  { %v1902_v43 = vpop.eup %1901 }
0x145a   :  { %v1042_v44 = vmul.f32 %v1902_v43, %v1035_v55 }
0x145c   :  { %v1043_v45 = vmul.f32 %v1042_v44, %v2427_v52 }
0x145e   :  { %v1044_v46 = vadd.f32 %v1043_v45, %v2430_v54 }
0x1460   :  { %v1046_v47 = vmul.f32 0.70710677, %v1044_v46  ;;  %v1045_v49 = vmul.f32 0.5, %v1044_v46 }
0x1462   :  { %1903 = verf.f32 %v1046_v47 }
0x146f   :  { %v1904_v48 = vpop.eup %1903 }
0x1470   :  { %v1048_v50 = vadd.f32 1.0, %v1904_v48 }
0x1472   :  { %v1049_v51 = vmul.f32 %v1048_v50, %v1045_v49 }
0x1474   :  { %v1050_v18 = vadd.f32 %v1049_v51, %v2591_v22 }
0x1476   :  { %1838 = vmatmul.mubr.f32.vlgmr.msra.gmra.mxu0 %v1050_v18 }
0x1536   :  { %v1138_v23 = vpop.f32.mrf.mxu0 }
0x1537   :  { %v1139_v52 = vadd.f32 %v1138_v23, %v1071_v20 }
0x1538   :  { %v1839_v25 = vpop.f32.mrf.mxu0 }
0x1539   :  { %v1143_v54 = vsel %vm1142_vm2, %v1139_v52, 0.0 }
0x153a   :  { %1144 = vadd.xlane.f32.xlu0 %v1143_v54 }
0x15c3   :  { %v1145_v27 = vpop.xlane.xlu0 %1144 }
0x15c4   :  { %v1147_v28 = vmul.f32 0.015625, %v1145_v27 }
0x15c6   :  { %v1148_v29 = vsub.f32 %v1139_v52, %v1147_v28 }
0x15c8   :  { %v1149_v30 = vmul.f32 %v1148_v29, %v1148_v29 }
0x15ca   :  { %v1150_v22 = vsel %vm1142_vm2, %v1149_v30, 0.0 }
0x15cb   :  { %1151 = vadd.xlane.f32.xlu1 %v1150_v22 }
0x1654   :  { %v1152_v15 = vpop.xlane.xlu1 %1151 }
0x1655   :  { %v1153_v26 = vmul.f32 0.015625, %v1152_v15 }
0x1657   :  { %v1154_v57 = vadd.f32 1e-05, %v1153_v26 }
0x1659   :  { %1905 = vrsqrt.f32 %v1154_v57 }
0x1666   :  { %v1906_v59 = vpop.eup %1905 }
0x1667   :  { %v1156_v61 = vmul.f32 %v1906_v59, %v1148_v29 }
0x1669   :  { %v1161_v62 = vmul.f32 %v1160_v58, %v1156_v61 }
0x166b   :  { %v1166_v63 = vadd.f32 %v1165_v60, %v1161_v62 }
0x166d   :  { %v1168_v1 = vmul.f32 0.70710677, %v1166_v63  ;;  %v1167_v2 = vmul.f32 0.5, %v1166_v63 }
0x166f   :  { %1907 = verf.f32 %v1168_v1 }
0x167c   :  { %v1908_v55 = vpop.eup %1907 }
0x167d   :  { %v1170_v11 = vadd.f32 1.0, %v1908_v55 }
0x167f   :  { %v1171_v3 = vmul.f32 %v1170_v11, %v1167_v2 }
0x1681   :  { %1857 = vmatmul.mubr.msk.f32.vlgmr.msra.gmra.mxu1 %vm1142_vm2, %v1171_v3 }
0x1741   :  { %v1254_v4 = vpop.f32.mrf.mxu1 }
0x1742   :  { %v1255_v5 = vadd.f32 %v1254_v4, %v1184_v21 }
0x1743   :  { %v1858_v7 = vpop.f32.mrf.mxu1 }
0x1744   :  { %v1259_v8 = vsel %vm1258_vm3, %v1255_v5, 0.0 }
0x1745   :  { %1260 = vadd.xlane.f32.xlu0 %v1259_v8 }
0x17ce   :  { %v1261_v9 = vpop.xlane.xlu0 %1260 }
0x17cf   :  { %v1263_v10 = vmul.f32 0.03125, %v1261_v9 }
0x17d1   :  { %v1264_v19 = vsub.f32 %v1255_v5, %v1263_v10 }
0x17d3   :  { %v1265_v16 = vmul.f32 %v1264_v19, %v1264_v19 }
0x17d5   :  { %v1266_v17 = vsel %vm1258_vm3, %v1265_v16, 0.0 }
0x17d6   :  { %1267 = vadd.xlane.f32.xlu1 %v1266_v17 }
0x185f   :  { %v1268_v34 = vpop.xlane.xlu1 %1267 }
0x1860   :  { %v1269_v37 = vmul.f32 0.03125, %v1268_v34 }
0x1862   :  { %v1270_v38 = vadd.f32 1e-05, %v1269_v37 }
0x1864   :  { %1909 = vrsqrt.f32 %v1270_v38 }
0x1871   :  { %v1910_v39 = vpop.eup %1909 }
0x1872   :  { %v1272_v41 = vmul.f32 %v1910_v39, %v1264_v19 }
0x1874   :  { %v1277_v42 = vmul.f32 %v1276_v6, %v1272_v41 }
0x1876   :  { %v1282_v43 = vadd.f32 %v1281_v40, %v1277_v42 }
0x1878   :  { %1283 = vst.msk [vmem:[#allocation5] sm:$0xff] %vm1258_vm3, %v1282_v43 }
0x1879   :  { %1942 = shalt.err (!%p1939_p9)
}
0x187a   :  { %1293 = dma.vmem_to_hbm [thread:$0]  %s1291_s20, 128, %s2733_s13, [#allocation4]  }
0x187b   :  { %1953 = dma.done.wait [#allocation4], 128  }
0x187c   :  { %1954 = vsyncadd [#allocation4], 4294967168 }
0x187d   :  { %1297 = vsyncpa [#allocation3], 1 }
0x187e   :  { %1298 = vsyncpa [#allocation4], 1 }

</bundles_post_ra>
